<compile_context>
chip_gen: v7x
topology: tpu7x:2x2x1
jax: 0.10.0
libtpu: 0.0.40
codegen_flags: <defaults>
</compile_context>

<pallas_src>
import math
from functools import partial

import jax
import jax.numpy as jnp
from jax.experimental import pallas as pl
from jax.experimental.pallas import tpu as pltpu


# MXU operand dtype (f32 accumulation is always kept).
_MXU_DTYPE = jnp.bfloat16


def _query_vmem_capacity():
    """Physical VMEM bytes for this generation (fallback: assume v7x 64 MiB)."""
    try:
        info = pltpu.get_tpu_info()
        cap = getattr(info, "vmem_capacity_bytes", None)
        if cap:
            return int(cap)
    except Exception:
        pass
    return 64 * 1024 * 1024


_VMEM_CAP = _query_vmem_capacity()
# ~75% of physical VMEM, capped at 100 MiB: ~96 MiB on v5e/v6e (128 MiB chips),
# ~48 MiB on v7x (64 MiB chips).
_VMEM_LIMIT = min(int(_VMEM_CAP * 3 // 4), 100 * 1024 * 1024)
_BIG_VMEM = _VMEM_CAP >= 96 * 1024 * 1024
_FFN_BM_TARGET = 512 if _BIG_VMEM else 256      # row-block target for FFN
_ATTN_TQ_TARGET = 512 if _BIG_VMEM else 256     # query-tile target for attention
_FFN_TF_TARGET = 2048 if _BIG_VMEM else 512     # F-stripe target for FFN weights


def _pick_block_rows(m, target):
    """Row block: full extent if it fits the target, else the largest multiple
    of 8 <= target that divides m (falls back to the full extent)."""
    if m <= target:
        return m
    for bm in range(min(m, target), 7, -1):
        if m % bm == 0 and bm % 8 == 0:
            return bm
    return m


def _pick_block_f(f, target=_FFN_TF_TARGET):
    """F stripe: full F, or a multiple of 128 dividing F (lane-aligned)."""
    if f <= target or f % 128 != 0:
        return f
    for tf in range(target - (target % 128), 127, -128):
        if f % tf == 0:
            return tf
    return f


# ----------------------------------------------------------------------------
# In-kernel helpers
# ----------------------------------------------------------------------------

def _layer_norm_rows(y, g, b, eps):
    # y: (rows, H) f32; g/b: (1, H) f32
    mu = jnp.mean(y, axis=-1, keepdims=True)
    var = jnp.mean(jnp.square(y - mu), axis=-1, keepdims=True)
    return (y - mu) * jax.lax.rsqrt(var + eps) * g + b


def _mha(q, k, v, wo, bo, *, nh, dh, scale, causal, row_offset):
    """Multi-head attention + single fused output projection.

    q: (Tq, P) f32, k/v: (Sk, P) f32, wo: (P, H) bf16, bo: (1, H) f32.
    Per-head contexts are concatenated so the output projection is ONE
    (Tq,P)@(P,H) matmul (good MXU contraction depth) instead of nh K=dh ones.
    """
    Tq, Sk = q.shape[0], k.shape[0]
    qb = q.astype(wo.dtype)
    kb = k.astype(wo.dtype)
    vb = v.astype(wo.dtype)

    if causal:
        rows = row_offset + jax.lax.broadcasted_iota(jnp.int32, (Tq, Sk), 0)
        cols = jax.lax.broadcasted_iota(jnp.int32, (Tq, Sk), 1)
        neg = jnp.where(cols > rows, -1e9, 0.0).astype(jnp.float32)

    ctxs = []
    for h in range(nh):                       # nh is small & static -> unrolled
        sl = slice(h * dh, (h + 1) * dh)
        # contract on the last dims: no kh transpose / relayout
        s = jax.lax.dot_general(qb[:, sl], kb[:, sl],
                                (((1,), (1,)), ((), ())),
                                preferred_element_type=jnp.float32) * scale
        if causal:
            s = s + neg
        s = s - jnp.max(s, axis=-1, keepdims=True)
        p = jnp.exp(s)
        p = p * pl.reciprocal(jnp.sum(p, axis=-1, keepdims=True), approx=True)
        ctxs.append(jnp.dot(p.astype(vb.dtype), vb[:, sl],
                            preferred_element_type=jnp.float32))       # (Tq, dh)
    ctx = ctxs[0] if nh == 1 else jnp.concatenate(ctxs, axis=-1)       # (Tq, P)
    return jnp.dot(ctx.astype(wo.dtype), wo,
                   preferred_element_type=jnp.float32) + bo            # (Tq, H)


# ----------------------------------------------------------------------------
# Pallas kernels
# ----------------------------------------------------------------------------

def _self_attn_ln_kernel(xq_ref, xkv_ref, wqkv_ref, bqkv_ref, wo_ref, bo_ref,
                         g_ref, beta_ref, o_ref, *, nh, dh, scale, causal, eps, tq):
    # xq_ref: (tq, H) query rows; xkv_ref: (S, H) full sequence (K/V source).
    P = nh * dh
    xq = xq_ref[...].astype(jnp.float32)
    xkv = xkv_ref[...].astype(jnp.float32)
    w = wqkv_ref[...]                              # (H, 3P) bf16, pre-packed
    b = bqkv_ref[...]                              # (1, 3P) f32
    q = jnp.dot(xq.astype(w.dtype), w[:, :P],
                preferred_element_type=jnp.float32) + b[:, :P]
    kv = jnp.dot(xkv.astype(w.dtype), w[:, P:],
                 preferred_element_type=jnp.float32) + b[:, P:]
    k, v = kv[:, :P], kv[:, P:]
    row_off = pl.program_id(1) * tq
    attn = _mha(q, k, v, wo_ref[...], bo_ref[...], nh=nh, dh=dh, scale=scale,
                causal=causal, row_offset=row_off)
    o_ref[...] = _layer_norm_rows(xq + attn, g_ref[...], beta_ref[...],
                                  eps).astype(o_ref.dtype)


def _cross_attn_ln_kernel(xq_ref, xkv_ref, wq_ref, bq_ref, wkv_ref, bkv_ref,
                          wo_ref, bo_ref, g_ref, beta_ref, o_ref,
                          *, nh, dh, scale, eps):
    P = nh * dh
    xq = xq_ref[...].astype(jnp.float32)           # (tq, H)  decoder rows
    xkv = xkv_ref[...].astype(jnp.float32)         # (Sk, H)  encoder output
    wq = wq_ref[...]
    q = jnp.dot(xq.astype(wq.dtype), wq,
                preferred_element_type=jnp.float32) + bq_ref[...]
    wkv = wkv_ref[...]                             # (H, 2P) bf16, pre-packed
    kv = jnp.dot(xkv.astype(wkv.dtype), wkv,
                 preferred_element_type=jnp.float32) + bkv_ref[...]
    k, v = kv[:, :P], kv[:, P:]
    attn = _mha(q, k, v, wo_ref[...], bo_ref[...], nh=nh, dh=dh, scale=scale,
                causal=False, row_offset=0)
    o_ref[...] = _layer_norm_rows(xq + attn, g_ref[...], beta_ref[...],
                                  eps).astype(o_ref.dtype)


def _ffn_ln_kernel(x_ref, w1_ref, b1_ref, w2_ref, b2_ref, g_ref, beta_ref,
                   o_ref, acc_ref, *, eps):
    # grid = (row-tile, F-stripe); relu is column-wise so the F reduction is
    # exact: sum_f relu(x@w1[:,f]+b1[f]) @ w2[f,:].
    f = pl.program_id(1)

    @pl.when(f == 0)
    def _():
        acc_ref[...] = jnp.zeros_like(acc_ref)

    x = x_ref[...].astype(jnp.float32)
    w1 = w1_ref[...]                               # (H, tF) bf16
    h = jnp.dot(x.astype(w1.dtype), w1,
                preferred_element_type=jnp.float32) + b1_ref[...]
    h = jnp.maximum(h, 0.0)
    w2 = w2_ref[...]                               # (tF, H) bf16
    acc_ref[...] += jnp.dot(h.astype(w2.dtype), w2,
                            preferred_element_type=jnp.float32)

    @pl.when(f == pl.num_programs(1) - 1)
    def _():
        y = x + acc_ref[...] + b2_ref[...]
        o_ref[...] = _layer_norm_rows(y, g_ref[...], beta_ref[...],
                                      eps).astype(o_ref.dtype)


def _ffn_ln_pool_cls_kernel(x_ref, w1_ref, b1_ref, w2_ref, b2_ref, g_ref,
                            beta_ref, wc_ref, o_ref, acc_ref, *, eps):
    # Last decoder layer, one batch element per (parallel) grid row:
    # FFN (F-stripe reduction) + residual + LN + max-over-seq + classifier.
    f = pl.program_id(1)

    @pl.when(f == 0)
    def _():
        acc_ref[...] = jnp.zeros_like(acc_ref)

    x = x_ref[...].astype(jnp.float32)             # (S, H)
    w1 = w1_ref[...]
    h = jnp.dot(x.astype(w1.dtype), w1,
                preferred_element_type=jnp.float32) + b1_ref[...]
    h = jnp.maximum(h, 0.0)
    w2 = w2_ref[...]
    acc_ref[...] += jnp.dot(h.astype(w2.dtype), w2,
                            preferred_element_type=jnp.float32)

    @pl.when(f == pl.num_programs(1) - 1)
    def _():
        y = _layer_norm_rows(x + acc_ref[...] + b2_ref[...],
                             g_ref[...], beta_ref[...], eps)           # (S, H)
        pooled = jnp.max(y, axis=0, keepdims=True)                     # (1, H)
        wc = wc_ref[...]                                               # (H, C) bf16
        o_ref[...] = jnp.dot(pooled.astype(wc.dtype), wc,
                             preferred_element_type=jnp.float32).astype(o_ref.dtype)


# ----------------------------------------------------------------------------
# Pallas wrappers
# ----------------------------------------------------------------------------

def self_attention_ln_block(x, p, ln_g, ln_b, *, causal, num_heads, head_dim, eps):
    B, S, H = x.shape
    P = num_heads * head_dim
    tq = _pick_block_rows(S, _ATTN_TQ_TARGET)
    scale = 1.0 / math.sqrt(head_dim)
    kernel = partial(_self_attn_ln_kernel, nh=num_heads, dh=head_dim,
                     scale=scale, causal=causal, eps=eps, tq=tq)
    return pl.pallas_call(
        kernel,
        out_shape=jax.ShapeDtypeStruct((B, S, H), x.dtype),
        grid=(B, S // tq),
        in_specs=[pl.BlockSpec((None, tq, H), lambda b, qi: (b, qi, 0)),   # query rows
                  pl.BlockSpec((None, S, H), lambda b, qi: (b, 0, 0)),     # K/V source
                  pl.BlockSpec((H, 3 * P), lambda b, qi: (0, 0)),
                  pl.BlockSpec((1, 3 * P), lambda b, qi: (0, 0)),
                  pl.BlockSpec((P, H), lambda b, qi: (0, 0)),
                  pl.BlockSpec((1, H), lambda b, qi: (0, 0)),
                  pl.BlockSpec((1, H), lambda b, qi: (0, 0)),
                  pl.BlockSpec((1, H), lambda b, qi: (0, 0))],
        out_specs=pl.BlockSpec((None, tq, H), lambda b, qi: (b, qi, 0)),
        compiler_params=pltpu.CompilerParams(
            dimension_semantics=("parallel", "parallel"),
            vmem_limit_bytes=_VMEM_LIMIT),
    )(x, x, p["wqkv"], p["bqkv"], p["wo"], p["bo"], ln_g, ln_b)


def cross_attention_ln_block(x_q, x_kv, p, ln_g, ln_b, *, num_heads, head_dim, eps):
    B, Sq, H = x_q.shape
    Sk = x_kv.shape[1]
    P = num_heads * head_dim
    tq = _pick_block_rows(Sq, _ATTN_TQ_TARGET)
    scale = 1.0 / math.sqrt(head_dim)
    kernel = partial(_cross_attn_ln_kernel, nh=num_heads, dh=head_dim,
                     scale=scale, eps=eps)
    return pl.pallas_call(
        kernel,
        out_shape=jax.ShapeDtypeStruct((B, Sq, H), x_q.dtype),
        grid=(B, Sq // tq),
        in_specs=[pl.BlockSpec((None, tq, H), lambda b, qi: (b, qi, 0)),
                  pl.BlockSpec((None, Sk, H), lambda b, qi: (b, 0, 0)),
                  pl.BlockSpec((H, P), lambda b, qi: (0, 0)),
                  pl.BlockSpec((1, P), lambda b, qi: (0, 0)),
                  pl.BlockSpec((H, 2 * P), lambda b, qi: (0, 0)),
                  pl.BlockSpec((1, 2 * P), lambda b, qi: (0, 0)),
                  pl.BlockSpec((P, H), lambda b, qi: (0, 0)),
                  pl.BlockSpec((1, H), lambda b, qi: (0, 0)),
                  pl.BlockSpec((1, H), lambda b, qi: (0, 0)),
                  pl.BlockSpec((1, H), lambda b, qi: (0, 0))],
        out_specs=pl.BlockSpec((None, tq, H), lambda b, qi: (b, qi, 0)),
        compiler_params=pltpu.CompilerParams(
            dimension_semantics=("parallel", "parallel"),
            vmem_limit_bytes=_VMEM_LIMIT),
    )(x_q, x_kv, p["wq"], p["bq"], p["wkv"], p["bkv"],
      p["wo"], p["bo"], ln_g, ln_b)


def ffn_ln_block(x, p, ln_g, ln_b, *, eps):
    B, S, H = x.shape
    F = p["w1"].shape[1]
    M = B * S
    bm = _pick_block_rows(M, _FFN_BM_TARGET)
    tF = _pick_block_f(F)
    x2 = x.reshape(M, H)
    out = pl.pallas_call(
        partial(_ffn_ln_kernel, eps=eps),
        out_shape=jax.ShapeDtypeStruct((M, H), x.dtype),
        grid=(M // bm, F // tF),
        in_specs=[pl.BlockSpec((bm, H), lambda i, f: (i, 0)),
                  pl.BlockSpec((H, tF), lambda i, f: (0, f)),
                  pl.BlockSpec((1, tF), lambda i, f: (0, f)),
                  pl.BlockSpec((tF, H), lambda i, f: (f, 0)),
                  pl.BlockSpec((1, H), lambda i, f: (0, 0)),
                  pl.BlockSpec((1, H), lambda i, f: (0, 0)),
                  pl.BlockSpec((1, H), lambda i, f: (0, 0))],
        out_specs=pl.BlockSpec((bm, H), lambda i, f: (i, 0)),
        scratch_shapes=[pltpu.VMEM((bm, H), jnp.float32)],
        compiler_params=pltpu.CompilerParams(
            dimension_semantics=("parallel", "arbitrary"),
            vmem_limit_bytes=_VMEM_LIMIT),
    )(x2, p["w1"], p["b1"], p["w2"], p["b2"], ln_g, ln_b)
    return out.reshape(B, S, H)


def ffn_ln_pool_classify(x, p, ln_g, ln_b, wc, *, eps):
    # Fused last decoder layer epilogue: FFN + LN + max-over-seq + classifier.
    # Gridded over B ("parallel") so v7x's second TensorCore is used; F is an
    # "arbitrary" reduction axis with an accumulator scratch.
    B, S, H = x.shape
    F = p["w1"].shape[1]
    C = wc.shape[1]
    tF = _pick_block_f(F)
    out = pl.pallas_call(
        partial(_ffn_ln_pool_cls_kernel, eps=eps),
        out_shape=jax.ShapeDtypeStruct((B, 1, C), x.dtype),
        grid=(B, F // tF),
        in_specs=[pl.BlockSpec((None, S, H), lambda b, f: (b, 0, 0)),
                  pl.BlockSpec((H, tF), lambda b, f: (0, f)),
                  pl.BlockSpec((1, tF), lambda b, f: (0, f)),
                  pl.BlockSpec((tF, H), lambda b, f: (f, 0)),
                  pl.BlockSpec((1, H), lambda b, f: (0, 0)),
                  pl.BlockSpec((1, H), lambda b, f: (0, 0)),
                  pl.BlockSpec((1, H), lambda b, f: (0, 0)),
                  pl.BlockSpec((H, C), lambda b, f: (0, 0))],
        out_specs=pl.BlockSpec((None, 1, C), lambda b, f: (b, 0, 0)),
        scratch_shapes=[pltpu.VMEM((S, H), jnp.float32)],
        compiler_params=pltpu.CompilerParams(
            dimension_semantics=("parallel", "arbitrary"),
            vmem_limit_bytes=_VMEM_LIMIT),
    )(x, p["w1"], p["b1"], p["w2"], p["b2"], ln_g, ln_b, wc)
    return out.reshape(B, C)


# ----------------------------------------------------------------------------
# Model (plain-JAX glue around the fused kernels)
# ----------------------------------------------------------------------------

def sinusoid_pos_encoding(seq_len, dim):
    pos = jnp.arange(seq_len, dtype=jnp.float32)[:, None]
    i = jnp.arange(dim, dtype=jnp.float32)[None, :]
    angle = pos / jnp.power(10000.0, (2.0 * jnp.floor(i / 2.0)) / dim)
    return jnp.where((jnp.arange(dim) % 2) == 0, jnp.sin(angle), jnp.cos(angle))


def movie_classification_forward(params, enc_inputs, dec_inputs, cfg):
    S, H = cfg["sequence_length"], cfg["hidden_dim"]
    nh, dh, eps = cfg["num_heads"], cfg["head_dim"], cfg["layer_norm_eps"]

    pe = sinusoid_pos_encoding(S, H).astype(jnp.float32)

    # --- encoder --- (2 fused pallas_calls per layer)
    x = enc_inputs + pe[None]
    for lp in params["enc_layers"]:
        x = self_attention_ln_block(x, lp["attn"], lp["ln1_g"], lp["ln1_b"],
                                    causal=False, num_heads=nh, head_dim=dh, eps=eps)
        x = ffn_ln_block(x, lp["ffn"], lp["ln2_g"], lp["ln2_b"], eps=eps)

    # --- decoder --- (3 fused pallas_calls per layer, last one includes head)
    n_dec = len(params["dec_layers"])
    assert n_dec >= 1
    y = dec_inputs + pe[None]
    logits = None
    for li, lp in enumerate(params["dec_layers"]):
        y = self_attention_ln_block(y, lp["self_attn"], lp["ln1_g"], lp["ln1_b"],
                                    causal=True, num_heads=nh, head_dim=dh, eps=eps)
        y = cross_attention_ln_block(y, x, lp["cross_attn"], lp["ln2_g"], lp["ln2_b"],
                                     num_heads=nh, head_dim=dh, eps=eps)
        if li == n_dec - 1:
            logits = ffn_ln_pool_classify(y, lp["ffn"], lp["ln3_g"], lp["ln3_b"],
                                          params["classifier_w"], eps=eps)
        else:
            y = ffn_ln_block(y, lp["ffn"], lp["ln3_g"], lp["ln3_b"], eps=eps)
    return logits


# ----------------------------------------------------------------------------
# Deterministic parameter init (weights pre-packed + pre-cast to bf16 ONCE)
# ----------------------------------------------------------------------------

def init_params(key, *, num_layers, hidden_dim, num_heads, head_dim,
                feed_forward_dim, num_classes):
    H, F = hidden_dim, feed_forward_dim
    P = num_heads * head_dim
    keys = iter(jax.random.split(key, 4096))

    def dense(fan_in, fan_out):
        return 0.02 * jax.random.normal(next(keys), (fan_in, fan_out), jnp.float32)

    def attn_self():
        wq, wk, wv, wo = dense(H, P), dense(H, P), dense(H, P), dense(P, H)
        return {"wqkv": jnp.concatenate([wq, wk, wv], axis=1).astype(_MXU_DTYPE),
                "bqkv": jnp.zeros((1, 3 * P), jnp.float32),
                "wo": wo.astype(_MXU_DTYPE),
                "bo": jnp.zeros((1, H), jnp.float32)}

    def attn_cross():
        wq, wk, wv, wo = dense(H, P), dense(H, P), dense(H, P), dense(P, H)
        return {"wq": wq.astype(_MXU_DTYPE),
                "bq": jnp.zeros((1, P), jnp.float32),
                "wkv": jnp.concatenate([wk, wv], axis=1).astype(_MXU_DTYPE),
                "bkv": jnp.zeros((1, 2 * P), jnp.float32),
                "wo": wo.astype(_MXU_DTYPE),
                "bo": jnp.zeros((1, H), jnp.float32)}

    def ffn():
        return {"w1": dense(H, F).astype(_MXU_DTYPE),
                "b1": jnp.zeros((1, F), jnp.float32),
                "w2": dense(F, H).astype(_MXU_DTYPE),
                "b2": jnp.zeros((1, H), jnp.float32)}

    def ln():
        return jnp.ones((1, H), jnp.float32), jnp.zeros((1, H), jnp.float32)

    enc_layers, dec_layers = [], []
    for _ in range(num_layers):
        g1, b1 = ln(); g2, b2 = ln()
        enc_layers.append({"attn": attn_self(), "ln1_g": g1, "ln1_b": b1,
                           "ffn": ffn(), "ln2_g": g2, "ln2_b": b2})
    for _ in range(num_layers):
        g1, b1 = ln(); g2, b2 = ln(); g3, b3 = ln()
        dec_layers.append({"self_attn": attn_self(), "cross_attn": attn_cross(),
                           "ln1_g": g1, "ln1_b": b1,
                           "ln2_g": g2, "ln2_b": b2,
                           "ffn": ffn(), "ln3_g": g3, "ln3_b": b3})
    return {"enc_layers": enc_layers, "dec_layers": dec_layers,
            "classifier_w": dense(H, num_classes).astype(_MXU_DTYPE)}


# ----------------------------------------------------------------------------
# Main
# ----------------------------------------------------------------------------

if __name__ == "__main__":
    cfg = dict(sequence_length=8, num_layers=2, hidden_dim=32, num_heads=2,
               head_dim=16, feed_forward_dim=64, dropout_prob=0.1,
               layer_norm_eps=1e-6, num_classes=4)
    B = 2

    root = jax.random.PRNGKey(0)
    k_enc, k_dec, k_params = jax.random.split(root, 3)
    enc_inputs = jax.random.normal(
        k_enc, (B, cfg["sequence_length"], cfg["hidden_dim"]), jnp.float32)
    dec_inputs = jax.random.normal(
        k_dec, (B, cfg["sequence_length"], cfg["hidden_dim"]), jnp.float32)

    params = init_params(k_params,
                         num_layers=cfg["num_layers"], hidden_dim=cfg["hidden_dim"],
                         num_heads=cfg["num_heads"], head_dim=cfg["head_dim"],
                         feed_forward_dim=cfg["feed_forward_dim"],
                         num_classes=cfg["num_classes"])

    fwd = jax.jit(partial(movie_classification_forward, cfg=cfg))
    logits = fwd(params, enc_inputs, dec_inputs)
    jax.block_until_ready(logits)
    assert logits.shape == (B, cfg["num_classes"])
    assert bool(jnp.all(jnp.isfinite(logits)))
    print("KERNEL_OK")
</pallas_src>

<mosaic_0001>
module attributes {stable_mosaic.version = 11 : i64} {
  func.func @_ffn_ln_kernel(%arg0: i32, %arg1: i32, %arg2: memref<16x32xf32, #tpu.memory_space<vmem>>, %arg3: memref<32x64xbf16, #tpu.memory_space<vmem>>, %arg4: memref<1x64xf32, #tpu.memory_space<vmem>>, %arg5: memref<64x32xbf16, #tpu.memory_space<vmem>>, %arg6: memref<1x32xf32, #tpu.memory_space<vmem>>, %arg7: memref<1x32xf32, #tpu.memory_space<vmem>>, %arg8: memref<1x32xf32, #tpu.memory_space<vmem>>, %arg9: memref<16x32xf32, #tpu.memory_space<vmem>>, %arg10: memref<16x32xf32, #tpu.memory_space<vmem>>) attributes {dimension_semantics = [#tpu.dimension_semantics<parallel>, #tpu.dimension_semantics<arbitrary>], iteration_bounds = array<i64: 1, 1>, scalar_prefetch = 0 : i64, scratch_operands = 1 : i64, tpu.core_type = #tpu.core_type<tc>, window_params = [{transform_indices = @transform_0, window_bounds = array<i64: 16, 32>}, {transform_indices = @transform_1, window_bounds = array<i64: 32, 64>}, {transform_indices = @transform_2, window_bounds = array<i64: 1, 64>}, {transform_indices = @transform_3, window_bounds = array<i64: 64, 32>}, {pipeline_mode = #tpu.pipeline_mode<synchronous>, transform_indices = @transform_4, window_bounds = array<i64: 1, 32>}, {pipeline_mode = #tpu.pipeline_mode<synchronous>, transform_indices = @transform_5, window_bounds = array<i64: 1, 32>}, {pipeline_mode = #tpu.pipeline_mode<synchronous>, transform_indices = @transform_6, window_bounds = array<i64: 1, 32>}, {transform_indices = @transform_7, window_bounds = array<i64: 16, 32>}]} {
    %c0_i32 = arith.constant 0 : i32
    %0 = arith.cmpi eq, %arg1, %c0_i32 : i32
    %1 = arith.extui %0 : i1 to i32
    %c0_i32_0 = arith.constant 0 : i32
    %2 = arith.cmpi ne, %1, %c0_i32_0 : i32
    scf.if %2 {
      %cst_16 = arith.constant 0.000000e+00 : f32
      %21 = vector.broadcast %cst_16 : f32 to vector<16x32xf32>
      %c0_17 = arith.constant 0 : index
      %c0_18 = arith.constant 0 : index
      %22 = vector.load %arg10[%c0_17, %c0_18] : memref<16x32xf32, #tpu.memory_space<vmem>>, vector<16x32xf32>
      tpu.vector_store %arg10[%c0_17, %c0_18], %21 {strides = array<i32>} : memref<16x32xf32, #tpu.memory_space<vmem>>, vector<16x32xf32>,
    } else {
    }
    %c0 = arith.constant 0 : index
    %c0_1 = arith.constant 0 : index
    %3 = vector.load %arg2[%c0, %c0_1] : memref<16x32xf32, #tpu.memory_space<vmem>>, vector<16x32xf32>
    %c0_2 = arith.constant 0 : index
    %c0_3 = arith.constant 0 : index
    %4 = vector.load %arg3[%c0_2, %c0_3] : memref<32x64xbf16, #tpu.memory_space<vmem>>, vector<32x64xbf16>
    %5 = arith.truncf %3 : vector<16x32xf32> to vector<16x32xbf16>
    %cst = arith.constant dense<0.000000e+00> : vector<16x64xf32>
    %6 = tpu.matmul %5, %4, %cst {dimension_numbers = #tpu.dot_dimension_numbers<[1], [0], [0], [1], [0, 0, 1, 1], [], []>} : vector<16x32xbf16>, vector<32x64xbf16>, vector<16x64xf32> -> vector<16x64xf32>
    %c0_4 = arith.constant 0 : index
    %c0_5 = arith.constant 0 : index
    %7 = vector.load %arg4[%c0_4, %c0_5] : memref<1x64xf32, #tpu.memory_space<vmem>>, vector<1x64xf32>
    %8 = vector.broadcast %7 : vector<1x64xf32> to vector<16x64xf32>
    %9 = arith.addf %6, %8 : vector<16x64xf32>
    %cst_6 = arith.constant 0.000000e+00 : f32
    %10 = vector.broadcast %cst_6 : f32 to vector<16x64xf32>
    %11 = arith.maximumf %9, %10 : vector<16x64xf32>
    %c0_7 = arith.constant 0 : index
    %c0_8 = arith.constant 0 : index
    %12 = vector.load %arg5[%c0_7, %c0_8] : memref<64x32xbf16, #tpu.memory_space<vmem>>, vector<64x32xbf16>
    %c0_9 = arith.constant 0 : index
    %c0_10 = arith.constant 0 : index
    %13 = vector.load %arg10[%c0_9, %c0_10] : memref<16x32xf32, #tpu.memory_space<vmem>>, vector<16x32xf32>
    %14 = arith.truncf %11 : vector<16x64xf32> to vector<16x64xbf16>
    %cst_11 = arith.constant dense<0.000000e+00> : vector<16x32xf32>
    %15 = tpu.matmul %14, %12, %cst_11 {dimension_numbers = #tpu.dot_dimension_numbers<[1], [0], [0], [1], [0, 0, 1, 1], [], []>} : vector<16x64xbf16>, vector<64x32xbf16>, vector<16x32xf32> -> vector<16x32xf32>
    %16 = arith.addf %13, %15 : vector<16x32xf32>
    %c0_12 = arith.constant 0 : index
    %c0_13 = arith.constant 0 : index
    %17 = vector.load %arg10[%c0_12, %c0_13] : memref<16x32xf32, #tpu.memory_space<vmem>>, vector<16x32xf32>
    tpu.vector_store %arg10[%c0_12, %c0_13], %16 {strides = array<i32>} : memref<16x32xf32, #tpu.memory_space<vmem>>, vector<16x32xf32>,
    %c0_i32_14 = arith.constant 0 : i32
    %18 = arith.cmpi eq, %arg1, %c0_i32_14 : i32
    %19 = arith.extui %18 : i1 to i32
    %c0_i32_15 = arith.constant 0 : i32
    %20 = arith.cmpi ne, %19, %c0_i32_15 : i32
    scf.if %20 {
      %c0_16 = arith.constant 0 : index
      %c0_17 = arith.constant 0 : index
      %21 = vector.load %arg10[%c0_16, %c0_17] : memref<16x32xf32, #tpu.memory_space<vmem>>, vector<16x32xf32>
      %22 = arith.addf %3, %21 : vector<16x32xf32>
      %c0_18 = arith.constant 0 : index
      %c0_19 = arith.constant 0 : index
      %23 = vector.load %arg6[%c0_18, %c0_19] : memref<1x32xf32, #tpu.memory_space<vmem>>, vector<1x32xf32>
      %24 = vector.broadcast %23 : vector<1x32xf32> to vector<16x32xf32>
      %25 = arith.addf %22, %24 : vector<16x32xf32>
      %c0_20 = arith.constant 0 : index
      %c0_21 = arith.constant 0 : index
      %26 = vector.load %arg7[%c0_20, %c0_21] : memref<1x32xf32, #tpu.memory_space<vmem>>, vector<1x32xf32>
      %c0_22 = arith.constant 0 : index
      %c0_23 = arith.constant 0 : index
      %27 = vector.load %arg8[%c0_22, %c0_23] : memref<1x32xf32, #tpu.memory_space<vmem>>, vector<1x32xf32>
      %cst_24 = arith.constant dense<0.000000e+00> : vector<16xf32>
      %28 = vector.multi_reduction <add>, %25, %cst_24 [1] : vector<16x32xf32> to vector<16xf32>
      %29 = vector.shape_cast %28 : vector<16xf32> to vector<16x1xf32>
      %cst_25 = arith.constant 3.200000e+01 : f32
      %30 = vector.broadcast %cst_25 : f32 to vector<16x1xf32>
      %31 = arith.divf %29, %30 : vector<16x1xf32>
      %32 = vector.broadcast %31 : vector<16x1xf32> to vector<16x32xf32>
      %33 = arith.subf %25, %32 : vector<16x32xf32>
      %34 = arith.mulf %33, %33 : vector<16x32xf32>
      %cst_26 = arith.constant dense<0.000000e+00> : vector<16xf32>
      %35 = vector.multi_reduction <add>, %34, %cst_26 [1] : vector<16x32xf32> to vector<16xf32>
      %36 = vector.shape_cast %35 : vector<16xf32> to vector<16x1xf32>
      %cst_27 = arith.constant 3.200000e+01 : f32
      %37 = vector.broadcast %cst_27 : f32 to vector<16x1xf32>
      %38 = arith.divf %36, %37 : vector<16x1xf32>
      %39 = vector.broadcast %31 : vector<16x1xf32> to vector<16x32xf32>
      %40 = arith.subf %25, %39 : vector<16x32xf32>
      %cst_28 = arith.constant 9.99999997E-7 : f32
      %41 = vector.broadcast %cst_28 : f32 to vector<16x1xf32>
      %42 = arith.addf %38, %41 : vector<16x1xf32>
      %43 = math.rsqrt %42 : vector<16x1xf32>
      %44 = vector.broadcast %43 : vector<16x1xf32> to vector<16x32xf32>
      %45 = arith.mulf %40, %44 : vector<16x32xf32>
      %46 = vector.broadcast %26 : vector<1x32xf32> to vector<16x32xf32>
      %47 = arith.mulf %45, %46 : vector<16x32xf32>
      %48 = vector.broadcast %27 : vector<1x32xf32> to vector<16x32xf32>
      %49 = arith.addf %47, %48 : vector<16x32xf32>
      %c0_29 = arith.constant 0 : index
      %c0_30 = arith.constant 0 : index
      %50 = vector.load %arg9[%c0_29, %c0_30] : memref<16x32xf32, #tpu.memory_space<vmem>>, vector<16x32xf32>
      tpu.vector_store %arg9[%c0_29, %c0_30], %49 {strides = array<i32>} : memref<16x32xf32, #tpu.memory_space<vmem>>, vector<16x32xf32>,
    } else {
    }
    return
  }
  func.func @transform_0(%arg0: i32, %arg1: i32) -> (i32, i32) {
    %c0_i32 = arith.constant 0 : i32
    %c0_i32_0 = arith.constant 0 : i32
    return %arg0, %c0_i32 : i32, i32
  }
  func.func @transform_1(%arg0: i32, %arg1: i32) -> (i32, i32) {
    %c0_i32 = arith.constant 0 : i32
    %c0_i32_0 = arith.constant 0 : i32
    return %c0_i32, %arg1 : i32, i32
  }
  func.func @transform_2(%arg0: i32, %arg1: i32) -> (i32, i32) {
    %c0_i32 = arith.constant 0 : i32
    %c0_i32_0 = arith.constant 0 : i32
    return %c0_i32, %arg1 : i32, i32
  }
  func.func @transform_3(%arg0: i32, %arg1: i32) -> (i32, i32) {
    %c0_i32 = arith.constant 0 : i32
    %c0_i32_0 = arith.constant 0 : i32
    return %arg1, %c0_i32 : i32, i32
  }
  func.func @transform_4(%arg0: i32, %arg1: i32) -> (i32, i32) {
    %c0_i32 = arith.constant 0 : i32
    %c0_i32_0 = arith.constant 0 : i32
    %c0_i32_1 = arith.constant 0 : i32
    return %c0_i32, %c0_i32_0 : i32, i32
  }
  func.func @transform_5(%arg0: i32, %arg1: i32) -> (i32, i32) {
    %c0_i32 = arith.constant 0 : i32
    %c0_i32_0 = arith.constant 0 : i32
    %c0_i32_1 = arith.constant 0 : i32
    return %c0_i32, %c0_i32_0 : i32, i32
  }
  func.func @transform_6(%arg0: i32, %arg1: i32) -> (i32, i32) {
    %c0_i32 = arith.constant 0 : i32
    %c0_i32_0 = arith.constant 0 : i32
    %c0_i32_1 = arith.constant 0 : i32
    return %c0_i32, %c0_i32_0 : i32, i32
  }
  func.func @transform_7(%arg0: i32, %arg1: i32) -> (i32, i32) {
    %c0_i32 = arith.constant 0 : i32
    %c0_i32_0 = arith.constant 0 : i32
    return %arg0, %c0_i32 : i32, i32
  }
}

module attributes {stable_mosaic.version = 11 : i64} {
  func.func @_cross_attn_ln_kernel(%arg0: i32, %arg1: i32, %arg2: memref<1x8x32xf32, #tpu.memory_space<vmem>>, %arg3: memref<1x8x32xf32, #tpu.memory_space<vmem>>, %arg4: memref<32x32xbf16, #tpu.memory_space<vmem>>, %arg5: memref<1x32xf32, #tpu.memory_space<vmem>>, %arg6: memref<32x64xbf16, #tpu.memory_space<vmem>>, %arg7: memref<1x64xf32, #tpu.memory_space<vmem>>, %arg8: memref<32x32xbf16, #tpu.memory_space<vmem>>, %arg9: memref<1x32xf32, #tpu.memory_space<vmem>>, %arg10: memref<1x32xf32, #tpu.memory_space<vmem>>, %arg11: memref<1x32xf32, #tpu.memory_space<vmem>>, %arg12: memref<1x8x32xf32, #tpu.memory_space<vmem>>) attributes {dimension_semantics = [#tpu.dimension_semantics<parallel>, #tpu.dimension_semantics<parallel>], iteration_bounds = array<i64: 2, 1>, scalar_prefetch = 0 : i64, scratch_operands = 0 : i64, tpu.core_type = #tpu.core_type<tc>, window_params = [{transform_indices = @transform_0, window_bounds = array<i64: 1, 8, 32>}, {transform_indices = @transform_1, window_bounds = array<i64: 1, 8, 32>}, {pipeline_mode = #tpu.pipeline_mode<synchronous>, transform_indices = @transform_2, window_bounds = array<i64: 32, 32>}, {pipeline_mode = #tpu.pipeline_mode<synchronous>, transform_indices = @transform_3, window_bounds = array<i64: 1, 32>}, {pipeline_mode = #tpu.pipeline_mode<synchronous>, transform_indices = @transform_4, window_bounds = array<i64: 32, 64>}, {pipeline_mode = #tpu.pipeline_mode<synchronous>, transform_indices = @transform_5, window_bounds = array<i64: 1, 64>}, {pipeline_mode = #tpu.pipeline_mode<synchronous>, transform_indices = @transform_6, window_bounds = array<i64: 32, 32>}, {pipeline_mode = #tpu.pipeline_mode<synchronous>, transform_indices = @transform_7, window_bounds = array<i64: 1, 32>}, {pipeline_mode = #tpu.pipeline_mode<synchronous>, transform_indices = @transform_8, window_bounds = array<i64: 1, 32>}, {pipeline_mode = #tpu.pipeline_mode<synchronous>, transform_indices = @transform_9, window_bounds = array<i64: 1, 32>}, {transform_indices = @transform_10, window_bounds = array<i64: 1, 8, 32>}]} {
    %c0 = arith.constant 0 : index
    %c0_0 = arith.constant 0 : index
    %c0_1 = arith.constant 0 : index
    %0 = vector.load %arg2[%c0, %c0_0, %c0_1] : memref<1x8x32xf32, #tpu.memory_space<vmem>>, vector<1x8x32xf32>
    %1 = vector.shape_cast %0 : vector<1x8x32xf32> to vector<8x32xf32>
    %c0_2 = arith.constant 0 : index
    %c0_3 = arith.constant 0 : index
    %c0_4 = arith.constant 0 : index
    %2 = vector.load %arg3[%c0_2, %c0_3, %c0_4] : memref<1x8x32xf32, #tpu.memory_space<vmem>>, vector<1x8x32xf32>
    %3 = vector.shape_cast %2 : vector<1x8x32xf32> to vector<8x32xf32>
    %c0_5 = arith.constant 0 : index
    %c0_6 = arith.constant 0 : index
    %4 = vector.load %arg4[%c0_5, %c0_6] : memref<32x32xbf16, #tpu.memory_space<vmem>>, vector<32x32xbf16>
    %5 = arith.truncf %1 : vector<8x32xf32> to vector<8x32xbf16>
    %cst = arith.constant dense<0.000000e+00> : vector<8x32xf32>
    %6 = tpu.matmul %5, %4, %cst {dimension_numbers = #tpu.dot_dimension_numbers<[1], [0], [0], [1], [0, 0, 1, 1], [], []>} : vector<8x32xbf16>, vector<32x32xbf16>, vector<8x32xf32> -> vector<8x32xf32>
    %c0_7 = arith.constant 0 : index
    %c0_8 = arith.constant 0 : index
    %7 = vector.load %arg5[%c0_7, %c0_8] : memref<1x32xf32, #tpu.memory_space<vmem>>, vector<1x32xf32>
    %8 = vector.broadcast %7 : vector<1x32xf32> to vector<8x32xf32>
    %9 = arith.addf %6, %8 : vector<8x32xf32>
    %c0_9 = arith.constant 0 : index
    %c0_10 = arith.constant 0 : index
    %10 = vector.load %arg6[%c0_9, %c0_10] : memref<32x64xbf16, #tpu.memory_space<vmem>>, vector<32x64xbf16>
    %11 = arith.truncf %3 : vector<8x32xf32> to vector<8x32xbf16>
    %cst_11 = arith.constant dense<0.000000e+00> : vector<8x64xf32>
    %12 = tpu.matmul %11, %10, %cst_11 {dimension_numbers = #tpu.dot_dimension_numbers<[1], [0], [0], [1], [0, 0, 1, 1], [], []>} : vector<8x32xbf16>, vector<32x64xbf16>, vector<8x64xf32> -> vector<8x64xf32>
    %c0_12 = arith.constant 0 : index
    %c0_13 = arith.constant 0 : index
    %13 = vector.load %arg7[%c0_12, %c0_13] : memref<1x64xf32, #tpu.memory_space<vmem>>, vector<1x64xf32>
    %14 = vector.broadcast %13 : vector<1x64xf32> to vector<8x64xf32>
    %15 = arith.addf %12, %14 : vector<8x64xf32>
    %16 = vector.extract_strided_slice %15 {offsets = [0, 0], sizes = [8, 32], strides = [1, 1]} : vector<8x64xf32> to vector<8x32xf32>
    %17 = vector.extract_strided_slice %15 {offsets = [0, 32], sizes = [8, 32], strides = [1, 1]} : vector<8x64xf32> to vector<8x32xf32>
    %c0_14 = arith.constant 0 : index
    %c0_15 = arith.constant 0 : index
    %18 = vector.load %arg8[%c0_14, %c0_15] : memref<32x32xbf16, #tpu.memory_space<vmem>>, vector<32x32xbf16>
    %c0_16 = arith.constant 0 : index
    %c0_17 = arith.constant 0 : index
    %19 = vector.load %arg9[%c0_16, %c0_17] : memref<1x32xf32, #tpu.memory_space<vmem>>, vector<1x32xf32>
    %20 = arith.truncf %9 : vector<8x32xf32> to vector<8x32xbf16>
    %21 = arith.truncf %16 : vector<8x32xf32> to vector<8x32xbf16>
    %22 = arith.truncf %17 : vector<8x32xf32> to vector<8x32xbf16>
    %23 = vector.extract_strided_slice %20 {offsets = [0, 0], sizes = [8, 16], strides = [1, 1]} : vector<8x32xbf16> to vector<8x16xbf16>
    %24 = vector.extract_strided_slice %21 {offsets = [0, 0], sizes = [8, 16], strides = [1, 1]} : vector<8x32xbf16> to vector<8x16xbf16>
    %cst_18 = arith.constant dense<0.000000e+00> : vector<8x8xf32>
    %25 = tpu.matmul %23, %24, %cst_18 {dimension_numbers = #tpu.dot_dimension_numbers<[1], [1], [0], [0], [0, 0, 1, 0], [], []>} : vector<8x16xbf16>, vector<8x16xbf16>, vector<8x8xf32> -> vector<8x8xf32>
    %cst_19 = arith.constant 2.500000e-01 : f32
    %26 = vector.broadcast %cst_19 : f32 to vector<8x8xf32>
    %27 = arith.mulf %25, %26 : vector<8x8xf32>
    %cst_20 = arith.constant dense<0xFF800000> : vector<8xf32>
    %28 = vector.multi_reduction <maximumf>, %27, %cst_20 [1] : vector<8x8xf32> to vector<8xf32>
    %29 = vector.shape_cast %28 : vector<8xf32> to vector<8x1xf32>
    %30 = vector.broadcast %29 : vector<8x1xf32> to vector<8x8xf32>
    %31 = arith.subf %27, %30 : vector<8x8xf32>
    %32 = math.exp %31 : vector<8x8xf32>
    %cst_21 = arith.constant dense<0.000000e+00> : vector<8xf32>
    %33 = vector.multi_reduction <add>, %32, %cst_21 [1] : vector<8x8xf32> to vector<8xf32>
    %34 = vector.shape_cast %33 : vector<8xf32> to vector<8x1xf32>
    %35 = tpu.reciprocal %34 {approx = true} : vector<8x1xf32> -> vector<8x1xf32>
    %36 = vector.broadcast %35 : vector<8x1xf32> to vector<8x8xf32>
    %37 = arith.mulf %32, %36 : vector<8x8xf32>
    %38 = arith.truncf %37 : vector<8x8xf32> to vector<8x8xbf16>
    %39 = vector.extract_strided_slice %22 {offsets = [0, 0], sizes = [8, 16], strides = [1, 1]} : vector<8x32xbf16> to vector<8x16xbf16>
    %cst_22 = arith.constant dense<0.000000e+00> : vector<8x16xf32>
    %40 = tpu.matmul %38, %39, %cst_22 {dimension_numbers = #tpu.dot_dimension_numbers<[1], [0], [0], [1], [0, 0, 1, 1], [], []>} : vector<8x8xbf16>, vector<8x16xbf16>, vector<8x16xf32> -> vector<8x16xf32>
    %41 = vector.extract_strided_slice %20 {offsets = [0, 16], sizes = [8, 16], strides = [1, 1]} : vector<8x32xbf16> to vector<8x16xbf16>
    %42 = vector.extract_strided_slice %21 {offsets = [0, 16], sizes = [8, 16], strides = [1, 1]} : vector<8x32xbf16> to vector<8x16xbf16>
    %cst_23 = arith.constant dense<0.000000e+00> : vector<8x8xf32>
    %43 = tpu.matmul %41, %42, %cst_23 {dimension_numbers = #tpu.dot_dimension_numbers<[1], [1], [0], [0], [0, 0, 1, 0], [], []>} : vector<8x16xbf16>, vector<8x16xbf16>, vector<8x8xf32> -> vector<8x8xf32>
    %cst_24 = arith.constant 2.500000e-01 : f32
    %44 = vector.broadcast %cst_24 : f32 to vector<8x8xf32>
    %45 = arith.mulf %43, %44 : vector<8x8xf32>
    %cst_25 = arith.constant dense<0xFF800000> : vector<8xf32>
    %46 = vector.multi_reduction <maximumf>, %45, %cst_25 [1] : vector<8x8xf32> to vector<8xf32>
    %47 = vector.shape_cast %46 : vector<8xf32> to vector<8x1xf32>
    %48 = vector.broadcast %47 : vector<8x1xf32> to vector<8x8xf32>
    %49 = arith.subf %45, %48 : vector<8x8xf32>
    %50 = math.exp %49 : vector<8x8xf32>
    %cst_26 = arith.constant dense<0.000000e+00> : vector<8xf32>
    %51 = vector.multi_reduction <add>, %50, %cst_26 [1] : vector<8x8xf32> to vector<8xf32>
    %52 = vector.shape_cast %51 : vector<8xf32> to vector<8x1xf32>
    %53 = tpu.reciprocal %52 {approx = true} : vector<8x1xf32> -> vector<8x1xf32>
    %54 = vector.broadcast %53 : vector<8x1xf32> to vector<8x8xf32>
    %55 = arith.mulf %50, %54 : vector<8x8xf32>
    %56 = arith.truncf %55 : vector<8x8xf32> to vector<8x8xbf16>
    %57 = vector.extract_strided_slice %22 {offsets = [0, 16], sizes = [8, 16], strides = [1, 1]} : vector<8x32xbf16> to vector<8x16xbf16>
    %cst_27 = arith.constant dense<0.000000e+00> : vector<8x16xf32>
    %58 = tpu.matmul %56, %57, %cst_27 {dimension_numbers = #tpu.dot_dimension_numbers<[1], [0], [0], [1], [0, 0, 1, 1], [], []>} : vector<8x8xbf16>, vector<8x16xbf16>, vector<8x16xf32> -> vector<8x16xf32>
    %59 = tpu.concatenate %40, %58 in 1 : vector<8x16xf32>, vector<8x16xf32> -> vector<8x32xf32>
    %60 = arith.truncf %59 : vector<8x32xf32> to vector<8x32xbf16>
    %cst_28 = arith.constant dense<0.000000e+00> : vector<8x32xf32>
    %61 = tpu.matmul %60, %18, %cst_28 {dimension_numbers = #tpu.dot_dimension_numbers<[1], [0], [0], [1], [0, 0, 1, 1], [], []>} : vector<8x32xbf16>, vector<32x32xbf16>, vector<8x32xf32> -> vector<8x32xf32>
    %62 = vector.broadcast %19 : vector<1x32xf32> to vector<8x32xf32>
    %63 = arith.addf %61, %62 : vector<8x32xf32>
    %64 = arith.addf %1, %63 : vector<8x32xf32>
    %c0_29 = arith.constant 0 : index
    %c0_30 = arith.constant 0 : index
    %65 = vector.load %arg10[%c0_29, %c0_30] : memref<1x32xf32, #tpu.memory_space<vmem>>, vector<1x32xf32>
    %c0_31 = arith.constant 0 : index
    %c0_32 = arith.constant 0 : index
    %66 = vector.load %arg11[%c0_31, %c0_32] : memref<1x32xf32, #tpu.memory_space<vmem>>, vector<1x32xf32>
    %cst_33 = arith.constant dense<0.000000e+00> : vector<8xf32>
    %67 = vector.multi_reduction <add>, %64, %cst_33 [1] : vector<8x32xf32> to vector<8xf32>
    %68 = vector.shape_cast %67 : vector<8xf32> to vector<8x1xf32>
    %cst_34 = arith.constant 3.200000e+01 : f32
    %69 = vector.broadcast %cst_34 : f32 to vector<8x1xf32>
    %70 = arith.divf %68, %69 : vector<8x1xf32>
    %71 = vector.broadcast %70 : vector<8x1xf32> to vector<8x32xf32>
    %72 = arith.subf %64, %71 : vector<8x32xf32>
    %73 = arith.mulf %72, %72 : vector<8x32xf32>
    %cst_35 = arith.constant dense<0.000000e+00> : vector<8xf32>
    %74 = vector.multi_reduction <add>, %73, %cst_35 [1] : vector<8x32xf32> to vector<8xf32>
    %75 = vector.shape_cast %74 : vector<8xf32> to vector<8x1xf32>
    %cst_36 = arith.constant 3.200000e+01 : f32
    %76 = vector.broadcast %cst_36 : f32 to vector<8x1xf32>
    %77 = arith.divf %75, %76 : vector<8x1xf32>
    %78 = vector.broadcast %70 : vector<8x1xf32> to vector<8x32xf32>
    %79 = arith.subf %64, %78 : vector<8x32xf32>
    %cst_37 = arith.constant 9.99999997E-7 : f32
    %80 = vector.broadcast %cst_37 : f32 to vector<8x1xf32>
    %81 = arith.addf %77, %80 : vector<8x1xf32>
    %82 = math.rsqrt %81 : vector<8x1xf32>
    %83 = vector.broadcast %82 : vector<8x1xf32> to vector<8x32xf32>
    %84 = arith.mulf %79, %83 : vector<8x32xf32>
    %85 = vector.broadcast %65 : vector<1x32xf32> to vector<8x32xf32>
    %86 = arith.mulf %84, %85 : vector<8x32xf32>
    %87 = vector.broadcast %66 : vector<1x32xf32> to vector<8x32xf32>
    %88 = arith.addf %86, %87 : vector<8x32xf32>
    %c0_38 = arith.constant 0 : index
    %c0_39 = arith.constant 0 : index
    %c0_40 = arith.constant 0 : index
    %89 = vector.load %arg12[%c0_38, %c0_39, %c0_40] : memref<1x8x32xf32, #tpu.memory_space<vmem>>, vector<1x8x32xf32>
    %90 = vector.shape_cast %89 : vector<1x8x32xf32> to vector<8x32xf32>
    %91 = vector.shape_cast %88 : vector<8x32xf32> to vector<1x8x32xf32>
    tpu.vector_store %arg12[%c0_38, %c0_39, %c0_40], %91 {strides = array<i32>} : memref<1x8x32xf32, #tpu.memory_space<vmem>>, vector<1x8x32xf32>,
    return
  }
  func.func @transform_0(%arg0: i32, %arg1: i32) -> (i32, i32, i32) {
    %c0_i32 = arith.constant 0 : i32
    %c0_i32_0 = arith.constant 0 : i32
    return %arg0, %arg1, %c0_i32 : i32, i32, i32
  }
  func.func @transform_1(%arg0: i32, %arg1: i32) -> (i32, i32, i32) {
    %c0_i32 = arith.constant 0 : i32
    %c0_i32_0 = arith.constant 0 : i32
    %c0_i32_1 = arith.constant 0 : i32
    return %arg0, %c0_i32, %c0_i32_0 : i32, i32, i32
  }
  func.func @transform_2(%arg0: i32, %arg1: i32) -> (i32, i32) {
    %c0_i32 = arith.constant 0 : i32
    %c0_i32_0 = arith.constant 0 : i32
    %c0_i32_1 = arith.constant 0 : i32
    return %c0_i32, %c0_i32_0 : i32, i32
  }
  func.func @transform_3(%arg0: i32, %arg1: i32) -> (i32, i32) {
    %c0_i32 = arith.constant 0 : i32
    %c0_i32_0 = arith.constant 0 : i32
    %c0_i32_1 = arith.constant 0 : i32
    return %c0_i32, %c0_i32_0 : i32, i32
  }
  func.func @transform_4(%arg0: i32, %arg1: i32) -> (i32, i32) {
    %c0_i32 = arith.constant 0 : i32
    %c0_i32_0 = arith.constant 0 : i32
    %c0_i32_1 = arith.constant 0 : i32
    return %c0_i32, %c0_i32_0 : i32, i32
  }
  func.func @transform_5(%arg0: i32, %arg1: i32) -> (i32, i32) {
    %c0_i32 = arith.constant 0 : i32
    %c0_i32_0 = arith.constant 0 : i32
    %c0_i32_1 = arith.constant 0 : i32
    return %c0_i32, %c0_i32_0 : i32, i32
  }
  func.func @transform_6(%arg0: i32, %arg1: i32) -> (i32, i32) {
    %c0_i32 = arith.constant 0 : i32
    %c0_i32_0 = arith.constant 0 : i32
    %c0_i32_1 = arith.constant 0 : i32
    return %c0_i32, %c0_i32_0 : i32, i32
  }
  func.func @transform_7(%arg0: i32, %arg1: i32) -> (i32, i32) {
    %c0_i32 = arith.constant 0 : i32
    %c0_i32_0 = arith.constant 0 : i32
    %c0_i32_1 = arith.constant 0 : i32
    return %c0_i32, %c0_i32_0 : i32, i32
  }
  func.func @transform_8(%arg0: i32, %arg1: i32) -> (i32, i32) {
    %c0_i32 = arith.constant 0 : i32
    %c0_i32_0 = arith.constant 0 : i32
    %c0_i32_1 = arith.constant 0 : i32
    return %c0_i32, %c0_i32_0 : i32, i32
  }
  func.func @transform_9(%arg0: i32, %arg1: i32) -> (i32, i32) {
    %c0_i32 = arith.constant 0 : i32
    %c0_i32_0 = arith.constant 0 : i32
    %c0_i32_1 = arith.constant 0 : i32
    return %c0_i32, %c0_i32_0 : i32, i32
  }
  func.func @transform_10(%arg0: i32, %arg1: i32) -> (i32, i32, i32) {
    %c0_i32 = arith.constant 0 : i32
    %c0_i32_0 = arith.constant 0 : i32
    return %arg0, %arg1, %c0_i32 : i32, i32, i32
  }
}

module attributes {stable_mosaic.version = 11 : i64} {
  func.func @_self_attn_ln_kernel(%arg0: i32, %arg1: i32, %arg2: memref<1x8x32xf32, #tpu.memory_space<vmem>>, %arg3: memref<1x8x32xf32, #tpu.memory_space<vmem>>, %arg4: memref<32x96xbf16, #tpu.memory_space<vmem>>, %arg5: memref<1x96xf32, #tpu.memory_space<vmem>>, %arg6: memref<32x32xbf16, #tpu.memory_space<vmem>>, %arg7: memref<1x32xf32, #tpu.memory_space<vmem>>, %arg8: memref<1x32xf32, #tpu.memory_space<vmem>>, %arg9: memref<1x32xf32, #tpu.memory_space<vmem>>, %arg10: memref<1x8x32xf32, #tpu.memory_space<vmem>>) attributes {dimension_semantics = [#tpu.dimension_semantics<parallel>, #tpu.dimension_semantics<parallel>], iteration_bounds = array<i64: 2, 1>, scalar_prefetch = 0 : i64, scratch_operands = 0 : i64, tpu.core_type = #tpu.core_type<tc>, window_params = [{transform_indices = @transform_0, window_bounds = array<i64: 1, 8, 32>}, {transform_indices = @transform_1, window_bounds = array<i64: 1, 8, 32>}, {pipeline_mode = #tpu.pipeline_mode<synchronous>, transform_indices = @transform_2, window_bounds = array<i64: 32, 96>}, {pipeline_mode = #tpu.pipeline_mode<synchronous>, transform_indices = @transform_3, window_bounds = array<i64: 1, 96>}, {pipeline_mode = #tpu.pipeline_mode<synchronous>, transform_indices = @transform_4, window_bounds = array<i64: 32, 32>}, {pipeline_mode = #tpu.pipeline_mode<synchronous>, transform_indices = @transform_5, window_bounds = array<i64: 1, 32>}, {pipeline_mode = #tpu.pipeline_mode<synchronous>, transform_indices = @transform_6, window_bounds = array<i64: 1, 32>}, {pipeline_mode = #tpu.pipeline_mode<synchronous>, transform_indices = @transform_7, window_bounds = array<i64: 1, 32>}, {transform_indices = @transform_8, window_bounds = array<i64: 1, 8, 32>}]} {
    %c0 = arith.constant 0 : index
    %c0_0 = arith.constant 0 : index
    %c0_1 = arith.constant 0 : index
    %0 = vector.load %arg2[%c0, %c0_0, %c0_1] : memref<1x8x32xf32, #tpu.memory_space<vmem>>, vector<1x8x32xf32>
    %1 = vector.shape_cast %0 : vector<1x8x32xf32> to vector<8x32xf32>
    %c0_2 = arith.constant 0 : index
    %c0_3 = arith.constant 0 : index
    %c0_4 = arith.constant 0 : index
    %2 = vector.load %arg3[%c0_2, %c0_3, %c0_4] : memref<1x8x32xf32, #tpu.memory_space<vmem>>, vector<1x8x32xf32>
    %3 = vector.shape_cast %2 : vector<1x8x32xf32> to vector<8x32xf32>
    %c0_5 = arith.constant 0 : index
    %c0_6 = arith.constant 0 : index
    %4 = vector.load %arg4[%c0_5, %c0_6] : memref<32x96xbf16, #tpu.memory_space<vmem>>, vector<32x96xbf16>
    %c0_7 = arith.constant 0 : index
    %c0_8 = arith.constant 0 : index
    %5 = vector.load %arg5[%c0_7, %c0_8] : memref<1x96xf32, #tpu.memory_space<vmem>>, vector<1x96xf32>
    %6 = arith.truncf %1 : vector<8x32xf32> to vector<8x32xbf16>
    %7 = vector.extract_strided_slice %4 {offsets = [0, 0], sizes = [32, 32], strides = [1, 1]} : vector<32x96xbf16> to vector<32x32xbf16>
    %cst = arith.constant dense<0.000000e+00> : vector<8x32xf32>
    %8 = tpu.matmul %6, %7, %cst {dimension_numbers = #tpu.dot_dimension_numbers<[1], [0], [0], [1], [0, 0, 1, 1], [], []>} : vector<8x32xbf16>, vector<32x32xbf16>, vector<8x32xf32> -> vector<8x32xf32>
    %9 = vector.extract_strided_slice %5 {offsets = [0, 0], sizes = [1, 32], strides = [1, 1]} : vector<1x96xf32> to vector<1x32xf32>
    %10 = vector.broadcast %9 : vector<1x32xf32> to vector<8x32xf32>
    %11 = arith.addf %8, %10 : vector<8x32xf32>
    %12 = arith.truncf %3 : vector<8x32xf32> to vector<8x32xbf16>
    %13 = vector.extract_strided_slice %4 {offsets = [0, 32], sizes = [32, 64], strides = [1, 1]} : vector<32x96xbf16> to vector<32x64xbf16>
    %cst_9 = arith.constant dense<0.000000e+00> : vector<8x64xf32>
    %14 = tpu.matmul %12, %13, %cst_9 {dimension_numbers = #tpu.dot_dimension_numbers<[1], [0], [0], [1], [0, 0, 1, 1], [], []>} : vector<8x32xbf16>, vector<32x64xbf16>, vector<8x64xf32> -> vector<8x64xf32>
    %15 = vector.extract_strided_slice %5 {offsets = [0, 32], sizes = [1, 64], strides = [1, 1]} : vector<1x96xf32> to vector<1x64xf32>
    %16 = vector.broadcast %15 : vector<1x64xf32> to vector<8x64xf32>
    %17 = arith.addf %14, %16 : vector<8x64xf32>
    %18 = vector.extract_strided_slice %17 {offsets = [0, 0], sizes = [8, 32], strides = [1, 1]} : vector<8x64xf32> to vector<8x32xf32>
    %19 = vector.extract_strided_slice %17 {offsets = [0, 32], sizes = [8, 32], strides = [1, 1]} : vector<8x64xf32> to vector<8x32xf32>
    %c0_10 = arith.constant 0 : index
    %c0_11 = arith.constant 0 : index
    %20 = vector.load %arg6[%c0_10, %c0_11] : memref<32x32xbf16, #tpu.memory_space<vmem>>, vector<32x32xbf16>
    %c0_12 = arith.constant 0 : index
    %c0_13 = arith.constant 0 : index
    %21 = vector.load %arg7[%c0_12, %c0_13] : memref<1x32xf32, #tpu.memory_space<vmem>>, vector<1x32xf32>
    %22 = arith.truncf %11 : vector<8x32xf32> to vector<8x32xbf16>
    %23 = arith.truncf %18 : vector<8x32xf32> to vector<8x32xbf16>
    %24 = arith.truncf %19 : vector<8x32xf32> to vector<8x32xbf16>
    %25 = vector.extract_strided_slice %22 {offsets = [0, 0], sizes = [8, 16], strides = [1, 1]} : vector<8x32xbf16> to vector<8x16xbf16>
    %26 = vector.extract_strided_slice %23 {offsets = [0, 0], sizes = [8, 16], strides = [1, 1]} : vector<8x32xbf16> to vector<8x16xbf16>
    %cst_14 = arith.constant dense<0.000000e+00> : vector<8x8xf32>
    %27 = tpu.matmul %25, %26, %cst_14 {dimension_numbers = #tpu.dot_dimension_numbers<[1], [1], [0], [0], [0, 0, 1, 0], [], []>} : vector<8x16xbf16>, vector<8x16xbf16>, vector<8x8xf32> -> vector<8x8xf32>
    %cst_15 = arith.constant 2.500000e-01 : f32
    %28 = vector.broadcast %cst_15 : f32 to vector<8x8xf32>
    %29 = arith.mulf %27, %28 : vector<8x8xf32>
    %cst_16 = arith.constant dense<0xFF800000> : vector<8xf32>
    %30 = vector.multi_reduction <maximumf>, %29, %cst_16 [1] : vector<8x8xf32> to vector<8xf32>
    %31 = vector.shape_cast %30 : vector<8xf32> to vector<8x1xf32>
    %32 = vector.broadcast %31 : vector<8x1xf32> to vector<8x8xf32>
    %33 = arith.subf %29, %32 : vector<8x8xf32>
    %34 = math.exp %33 : vector<8x8xf32>
    %cst_17 = arith.constant dense<0.000000e+00> : vector<8xf32>
    %35 = vector.multi_reduction <add>, %34, %cst_17 [1] : vector<8x8xf32> to vector<8xf32>
    %36 = vector.shape_cast %35 : vector<8xf32> to vector<8x1xf32>
    %37 = tpu.reciprocal %36 {approx = true} : vector<8x1xf32> -> vector<8x1xf32>
    %38 = vector.broadcast %37 : vector<8x1xf32> to vector<8x8xf32>
    %39 = arith.mulf %34, %38 : vector<8x8xf32>
    %40 = arith.truncf %39 : vector<8x8xf32> to vector<8x8xbf16>
    %41 = vector.extract_strided_slice %24 {offsets = [0, 0], sizes = [8, 16], strides = [1, 1]} : vector<8x32xbf16> to vector<8x16xbf16>
    %cst_18 = arith.constant dense<0.000000e+00> : vector<8x16xf32>
    %42 = tpu.matmul %40, %41, %cst_18 {dimension_numbers = #tpu.dot_dimension_numbers<[1], [0], [0], [1], [0, 0, 1, 1], [], []>} : vector<8x8xbf16>, vector<8x16xbf16>, vector<8x16xf32> -> vector<8x16xf32>
    %43 = vector.extract_strided_slice %22 {offsets = [0, 16], sizes = [8, 16], strides = [1, 1]} : vector<8x32xbf16> to vector<8x16xbf16>
    %44 = vector.extract_strided_slice %23 {offsets = [0, 16], sizes = [8, 16], strides = [1, 1]} : vector<8x32xbf16> to vector<8x16xbf16>
    %cst_19 = arith.constant dense<0.000000e+00> : vector<8x8xf32>
    %45 = tpu.matmul %43, %44, %cst_19 {dimension_numbers = #tpu.dot_dimension_numbers<[1], [1], [0], [0], [0, 0, 1, 0], [], []>} : vector<8x16xbf16>, vector<8x16xbf16>, vector<8x8xf32> -> vector<8x8xf32>
    %cst_20 = arith.constant 2.500000e-01 : f32
    %46 = vector.broadcast %cst_20 : f32 to vector<8x8xf32>
    %47 = arith.mulf %45, %46 : vector<8x8xf32>
    %cst_21 = arith.constant dense<0xFF800000> : vector<8xf32>
    %48 = vector.multi_reduction <maximumf>, %47, %cst_21 [1] : vector<8x8xf32> to vector<8xf32>
    %49 = vector.shape_cast %48 : vector<8xf32> to vector<8x1xf32>
    %50 = vector.broadcast %49 : vector<8x1xf32> to vector<8x8xf32>
    %51 = arith.subf %47, %50 : vector<8x8xf32>
    %52 = math.exp %51 : vector<8x8xf32>
    %cst_22 = arith.constant dense<0.000000e+00> : vector<8xf32>
    %53 = vector.multi_reduction <add>, %52, %cst_22 [1] : vector<8x8xf32> to vector<8xf32>
    %54 = vector.shape_cast %53 : vector<8xf32> to vector<8x1xf32>
    %55 = tpu.reciprocal %54 {approx = true} : vector<8x1xf32> -> vector<8x1xf32>
    %56 = vector.broadcast %55 : vector<8x1xf32> to vector<8x8xf32>
    %57 = arith.mulf %52, %56 : vector<8x8xf32>
    %58 = arith.truncf %57 : vector<8x8xf32> to vector<8x8xbf16>
    %59 = vector.extract_strided_slice %24 {offsets = [0, 16], sizes = [8, 16], strides = [1, 1]} : vector<8x32xbf16> to vector<8x16xbf16>
    %cst_23 = arith.constant dense<0.000000e+00> : vector<8x16xf32>
    %60 = tpu.matmul %58, %59, %cst_23 {dimension_numbers = #tpu.dot_dimension_numbers<[1], [0], [0], [1], [0, 0, 1, 1], [], []>} : vector<8x8xbf16>, vector<8x16xbf16>, vector<8x16xf32> -> vector<8x16xf32>
    %61 = tpu.concatenate %42, %60 in 1 : vector<8x16xf32>, vector<8x16xf32> -> vector<8x32xf32>
    %62 = arith.truncf %61 : vector<8x32xf32> to vector<8x32xbf16>
    %cst_24 = arith.constant dense<0.000000e+00> : vector<8x32xf32>
    %63 = tpu.matmul %62, %20, %cst_24 {dimension_numbers = #tpu.dot_dimension_numbers<[1], [0], [0], [1], [0, 0, 1, 1], [], []>} : vector<8x32xbf16>, vector<32x32xbf16>, vector<8x32xf32> -> vector<8x32xf32>
    %64 = vector.broadcast %21 : vector<1x32xf32> to vector<8x32xf32>
    %65 = arith.addf %63, %64 : vector<8x32xf32>
    %66 = arith.addf %1, %65 : vector<8x32xf32>
    %c0_25 = arith.constant 0 : index
    %c0_26 = arith.constant 0 : index
    %67 = vector.load %arg8[%c0_25, %c0_26] : memref<1x32xf32, #tpu.memory_space<vmem>>, vector<1x32xf32>
    %c0_27 = arith.constant 0 : index
    %c0_28 = arith.constant 0 : index
    %68 = vector.load %arg9[%c0_27, %c0_28] : memref<1x32xf32, #tpu.memory_space<vmem>>, vector<1x32xf32>
    %cst_29 = arith.constant dense<0.000000e+00> : vector<8xf32>
    %69 = vector.multi_reduction <add>, %66, %cst_29 [1] : vector<8x32xf32> to vector<8xf32>
    %70 = vector.shape_cast %69 : vector<8xf32> to vector<8x1xf32>
    %cst_30 = arith.constant 3.200000e+01 : f32
    %71 = vector.broadcast %cst_30 : f32 to vector<8x1xf32>
    %72 = arith.divf %70, %71 : vector<8x1xf32>
    %73 = vector.broadcast %72 : vector<8x1xf32> to vector<8x32xf32>
    %74 = arith.subf %66, %73 : vector<8x32xf32>
    %75 = arith.mulf %74, %74 : vector<8x32xf32>
    %cst_31 = arith.constant dense<0.000000e+00> : vector<8xf32>
    %76 = vector.multi_reduction <add>, %75, %cst_31 [1] : vector<8x32xf32> to vector<8xf32>
    %77 = vector.shape_cast %76 : vector<8xf32> to vector<8x1xf32>
    %cst_32 = arith.constant 3.200000e+01 : f32
    %78 = vector.broadcast %cst_32 : f32 to vector<8x1xf32>
    %79 = arith.divf %77, %78 : vector<8x1xf32>
    %80 = vector.broadcast %72 : vector<8x1xf32> to vector<8x32xf32>
    %81 = arith.subf %66, %80 : vector<8x32xf32>
    %cst_33 = arith.constant 9.99999997E-7 : f32
    %82 = vector.broadcast %cst_33 : f32 to vector<8x1xf32>
    %83 = arith.addf %79, %82 : vector<8x1xf32>
    %84 = math.rsqrt %83 : vector<8x1xf32>
    %85 = vector.broadcast %84 : vector<8x1xf32> to vector<8x32xf32>
    %86 = arith.mulf %81, %85 : vector<8x32xf32>
    %87 = vector.broadcast %67 : vector<1x32xf32> to vector<8x32xf32>
    %88 = arith.mulf %86, %87 : vector<8x32xf32>
    %89 = vector.broadcast %68 : vector<1x32xf32> to vector<8x32xf32>
    %90 = arith.addf %88, %89 : vector<8x32xf32>
    %c0_34 = arith.constant 0 : index
    %c0_35 = arith.constant 0 : index
    %c0_36 = arith.constant 0 : index
    %91 = vector.load %arg10[%c0_34, %c0_35, %c0_36] : memref<1x8x32xf32, #tpu.memory_space<vmem>>, vector<1x8x32xf32>
    %92 = vector.shape_cast %91 : vector<1x8x32xf32> to vector<8x32xf32>
    %93 = vector.shape_cast %90 : vector<8x32xf32> to vector<1x8x32xf32>
    tpu.vector_store %arg10[%c0_34, %c0_35, %c0_36], %93 {strides = array<i32>} : memref<1x8x32xf32, #tpu.memory_space<vmem>>, vector<1x8x32xf32>,
    return
  }
  func.func @transform_0(%arg0: i32, %arg1: i32) -> (i32, i32, i32) {
    %c0_i32 = arith.constant 0 : i32
    %c0_i32_0 = arith.constant 0 : i32
    return %arg0, %arg1, %c0_i32 : i32, i32, i32
  }
  func.func @transform_1(%arg0: i32, %arg1: i32) -> (i32, i32, i32) {
    %c0_i32 = arith.constant 0 : i32
    %c0_i32_0 = arith.constant 0 : i32
    %c0_i32_1 = arith.constant 0 : i32
    return %arg0, %c0_i32, %c0_i32_0 : i32, i32, i32
  }
  func.func @transform_2(%arg0: i32, %arg1: i32) -> (i32, i32) {
    %c0_i32 = arith.constant 0 : i32
    %c0_i32_0 = arith.constant 0 : i32
    %c0_i32_1 = arith.constant 0 : i32
    return %c0_i32, %c0_i32_0 : i32, i32
  }
  func.func @transform_3(%arg0: i32, %arg1: i32) -> (i32, i32) {
    %c0_i32 = arith.constant 0 : i32
    %c0_i32_0 = arith.constant 0 : i32
    %c0_i32_1 = arith.constant 0 : i32
    return %c0_i32, %c0_i32_0 : i32, i32
  }
  func.func @transform_4(%arg0: i32, %arg1: i32) -> (i32, i32) {
    %c0_i32 = arith.constant 0 : i32
    %c0_i32_0 = arith.constant 0 : i32
    %c0_i32_1 = arith.constant 0 : i32
    return %c0_i32, %c0_i32_0 : i32, i32
  }
  func.func @transform_5(%arg0: i32, %arg1: i32) -> (i32, i32) {
    %c0_i32 = arith.constant 0 : i32
    %c0_i32_0 = arith.constant 0 : i32
    %c0_i32_1 = arith.constant 0 : i32
    return %c0_i32, %c0_i32_0 : i32, i32
  }
  func.func @transform_6(%arg0: i32, %arg1: i32) -> (i32, i32) {
    %c0_i32 = arith.constant 0 : i32
    %c0_i32_0 = arith.constant 0 : i32
    %c0_i32_1 = arith.constant 0 : i32
    return %c0_i32, %c0_i32_0 : i32, i32
  }
  func.func @transform_7(%arg0: i32, %arg1: i32) -> (i32, i32) {
    %c0_i32 = arith.constant 0 : i32
    %c0_i32_0 = arith.constant 0 : i32
    %c0_i32_1 = arith.constant 0 : i32
    return %c0_i32, %c0_i32_0 : i32, i32
  }
  func.func @transform_8(%arg0: i32, %arg1: i32) -> (i32, i32, i32) {
    %c0_i32 = arith.constant 0 : i32
    %c0_i32_0 = arith.constant 0 : i32
    return %arg0, %arg1, %c0_i32 : i32, i32, i32
  }
}

module attributes {stable_mosaic.version = 11 : i64} {
  func.func @_self_attn_ln_kernel(%arg0: i32, %arg1: i32, %arg2: memref<1x8x32xf32, #tpu.memory_space<vmem>>, %arg3: memref<1x8x32xf32, #tpu.memory_space<vmem>>, %arg4: memref<32x96xbf16, #tpu.memory_space<vmem>>, %arg5: memref<1x96xf32, #tpu.memory_space<vmem>>, %arg6: memref<32x32xbf16, #tpu.memory_space<vmem>>, %arg7: memref<1x32xf32, #tpu.memory_space<vmem>>, %arg8: memref<1x32xf32, #tpu.memory_space<vmem>>, %arg9: memref<1x32xf32, #tpu.memory_space<vmem>>, %arg10: memref<1x8x32xf32, #tpu.memory_space<vmem>>) attributes {dimension_semantics = [#tpu.dimension_semantics<parallel>, #tpu.dimension_semantics<parallel>], iteration_bounds = array<i64: 2, 1>, scalar_prefetch = 0 : i64, scratch_operands = 0 : i64, tpu.core_type = #tpu.core_type<tc>, window_params = [{transform_indices = @transform_0, window_bounds = array<i64: 1, 8, 32>}, {transform_indices = @transform_1, window_bounds = array<i64: 1, 8, 32>}, {pipeline_mode = #tpu.pipeline_mode<synchronous>, transform_indices = @transform_2, window_bounds = array<i64: 32, 96>}, {pipeline_mode = #tpu.pipeline_mode<synchronous>, transform_indices = @transform_3, window_bounds = array<i64: 1, 96>}, {pipeline_mode = #tpu.pipeline_mode<synchronous>, transform_indices = @transform_4, window_bounds = array<i64: 32, 32>}, {pipeline_mode = #tpu.pipeline_mode<synchronous>, transform_indices = @transform_5, window_bounds = array<i64: 1, 32>}, {pipeline_mode = #tpu.pipeline_mode<synchronous>, transform_indices = @transform_6, window_bounds = array<i64: 1, 32>}, {pipeline_mode = #tpu.pipeline_mode<synchronous>, transform_indices = @transform_7, window_bounds = array<i64: 1, 32>}, {transform_indices = @transform_8, window_bounds = array<i64: 1, 8, 32>}]} {
    %c0 = arith.constant 0 : index
    %c0_0 = arith.constant 0 : index
    %c0_1 = arith.constant 0 : index
    %0 = vector.load %arg2[%c0, %c0_0, %c0_1] : memref<1x8x32xf32, #tpu.memory_space<vmem>>, vector<1x8x32xf32>
    %1 = vector.shape_cast %0 : vector<1x8x32xf32> to vector<8x32xf32>
    %c0_2 = arith.constant 0 : index
    %c0_3 = arith.constant 0 : index
    %c0_4 = arith.constant 0 : index
    %2 = vector.load %arg3[%c0_2, %c0_3, %c0_4] : memref<1x8x32xf32, #tpu.memory_space<vmem>>, vector<1x8x32xf32>
    %3 = vector.shape_cast %2 : vector<1x8x32xf32> to vector<8x32xf32>
    %c0_5 = arith.constant 0 : index
    %c0_6 = arith.constant 0 : index
    %4 = vector.load %arg4[%c0_5, %c0_6] : memref<32x96xbf16, #tpu.memory_space<vmem>>, vector<32x96xbf16>
    %c0_7 = arith.constant 0 : index
    %c0_8 = arith.constant 0 : index
    %5 = vector.load %arg5[%c0_7, %c0_8] : memref<1x96xf32, #tpu.memory_space<vmem>>, vector<1x96xf32>
    %6 = arith.truncf %1 : vector<8x32xf32> to vector<8x32xbf16>
    %7 = vector.extract_strided_slice %4 {offsets = [0, 0], sizes = [32, 32], strides = [1, 1]} : vector<32x96xbf16> to vector<32x32xbf16>
    %cst = arith.constant dense<0.000000e+00> : vector<8x32xf32>
    %8 = tpu.matmul %6, %7, %cst {dimension_numbers = #tpu.dot_dimension_numbers<[1], [0], [0], [1], [0, 0, 1, 1], [], []>} : vector<8x32xbf16>, vector<32x32xbf16>, vector<8x32xf32> -> vector<8x32xf32>
    %9 = vector.extract_strided_slice %5 {offsets = [0, 0], sizes = [1, 32], strides = [1, 1]} : vector<1x96xf32> to vector<1x32xf32>
    %10 = vector.broadcast %9 : vector<1x32xf32> to vector<8x32xf32>
    %11 = arith.addf %8, %10 : vector<8x32xf32>
    %12 = arith.truncf %3 : vector<8x32xf32> to vector<8x32xbf16>
    %13 = vector.extract_strided_slice %4 {offsets = [0, 32], sizes = [32, 64], strides = [1, 1]} : vector<32x96xbf16> to vector<32x64xbf16>
    %cst_9 = arith.constant dense<0.000000e+00> : vector<8x64xf32>
    %14 = tpu.matmul %12, %13, %cst_9 {dimension_numbers = #tpu.dot_dimension_numbers<[1], [0], [0], [1], [0, 0, 1, 1], [], []>} : vector<8x32xbf16>, vector<32x64xbf16>, vector<8x64xf32> -> vector<8x64xf32>
    %15 = vector.extract_strided_slice %5 {offsets = [0, 32], sizes = [1, 64], strides = [1, 1]} : vector<1x96xf32> to vector<1x64xf32>
    %16 = vector.broadcast %15 : vector<1x64xf32> to vector<8x64xf32>
    %17 = arith.addf %14, %16 : vector<8x64xf32>
    %18 = vector.extract_strided_slice %17 {offsets = [0, 0], sizes = [8, 32], strides = [1, 1]} : vector<8x64xf32> to vector<8x32xf32>
    %19 = vector.extract_strided_slice %17 {offsets = [0, 32], sizes = [8, 32], strides = [1, 1]} : vector<8x64xf32> to vector<8x32xf32>
    %c8_i32 = arith.constant 8 : i32
    %20 = arith.muli %arg1, %c8_i32 : i32
    %c0_10 = arith.constant 0 : index
    %c0_11 = arith.constant 0 : index
    %21 = vector.load %arg6[%c0_10, %c0_11] : memref<32x32xbf16, #tpu.memory_space<vmem>>, vector<32x32xbf16>
    %c0_12 = arith.constant 0 : index
    %c0_13 = arith.constant 0 : index
    %22 = vector.load %arg7[%c0_12, %c0_13] : memref<1x32xf32, #tpu.memory_space<vmem>>, vector<1x32xf32>
    %23 = arith.truncf %11 : vector<8x32xf32> to vector<8x32xbf16>
    %24 = arith.truncf %18 : vector<8x32xf32> to vector<8x32xbf16>
    %25 = arith.truncf %19 : vector<8x32xf32> to vector<8x32xbf16>
    %26 = tpu.iota {dimensions = array<i32: 0>} : vector<8x8xi32>
    %27 = vector.broadcast %20 : i32 to vector<8x8xi32>
    %28 = arith.addi %27, %26 : vector<8x8xi32>
    %29 = tpu.iota {dimensions = array<i32: 1>} : vector<8x8xi32>
    %30 = arith.cmpi sgt, %29, %28 : vector<8x8xi32>
    %cst_14 = arith.constant -1.000000e+09 : f32
    %cst_15 = arith.constant 0.000000e+00 : f32
    %31 = vector.broadcast %cst_14 : f32 to vector<8x8xf32>
    %32 = vector.broadcast %cst_15 : f32 to vector<8x8xf32>
    %33 = arith.select %30, %31, %32 : vector<8x8xi1>, vector<8x8xf32>
    %34 = vector.extract_strided_slice %23 {offsets = [0, 0], sizes = [8, 16], strides = [1, 1]} : vector<8x32xbf16> to vector<8x16xbf16>
    %35 = vector.extract_strided_slice %24 {offsets = [0, 0], sizes = [8, 16], strides = [1, 1]} : vector<8x32xbf16> to vector<8x16xbf16>
    %cst_16 = arith.constant dense<0.000000e+00> : vector<8x8xf32>
    %36 = tpu.matmul %34, %35, %cst_16 {dimension_numbers = #tpu.dot_dimension_numbers<[1], [1], [0], [0], [0, 0, 1, 0], [], []>} : vector<8x16xbf16>, vector<8x16xbf16>, vector<8x8xf32> -> vector<8x8xf32>
    %cst_17 = arith.constant 2.500000e-01 : f32
    %37 = vector.broadcast %cst_17 : f32 to vector<8x8xf32>
    %38 = arith.mulf %36, %37 : vector<8x8xf32>
    %39 = arith.addf %38, %33 : vector<8x8xf32>
    %cst_18 = arith.constant dense<0xFF800000> : vector<8xf32>
    %40 = vector.multi_reduction <maximumf>, %39, %cst_18 [1] : vector<8x8xf32> to vector<8xf32>
    %41 = vector.shape_cast %40 : vector<8xf32> to vector<8x1xf32>
    %42 = vector.broadcast %41 : vector<8x1xf32> to vector<8x8xf32>
    %43 = arith.subf %39, %42 : vector<8x8xf32>
    %44 = math.exp %43 : vector<8x8xf32>
    %cst_19 = arith.constant dense<0.000000e+00> : vector<8xf32>
    %45 = vector.multi_reduction <add>, %44, %cst_19 [1] : vector<8x8xf32> to vector<8xf32>
    %46 = vector.shape_cast %45 : vector<8xf32> to vector<8x1xf32>
    %47 = tpu.reciprocal %46 {approx = true} : vector<8x1xf32> -> vector<8x1xf32>
    %48 = vector.broadcast %47 : vector<8x1xf32> to vector<8x8xf32>
    %49 = arith.mulf %44, %48 : vector<8x8xf32>
    %50 = arith.truncf %49 : vector<8x8xf32> to vector<8x8xbf16>
    %51 = vector.extract_strided_slice %25 {offsets = [0, 0], sizes = [8, 16], strides = [1, 1]} : vector<8x32xbf16> to vector<8x16xbf16>
    %cst_20 = arith.constant dense<0.000000e+00> : vector<8x16xf32>
    %52 = tpu.matmul %50, %51, %cst_20 {dimension_numbers = #tpu.dot_dimension_numbers<[1], [0], [0], [1], [0, 0, 1, 1], [], []>} : vector<8x8xbf16>, vector<8x16xbf16>, vector<8x16xf32> -> vector<8x16xf32>
    %53 = vector.extract_strided_slice %23 {offsets = [0, 16], sizes = [8, 16], strides = [1, 1]} : vector<8x32xbf16> to vector<8x16xbf16>
    %54 = vector.extract_strided_slice %24 {offsets = [0, 16], sizes = [8, 16], strides = [1, 1]} : vector<8x32xbf16> to vector<8x16xbf16>
    %cst_21 = arith.constant dense<0.000000e+00> : vector<8x8xf32>
    %55 = tpu.matmul %53, %54, %cst_21 {dimension_numbers = #tpu.dot_dimension_numbers<[1], [1], [0], [0], [0, 0, 1, 0], [], []>} : vector<8x16xbf16>, vector<8x16xbf16>, vector<8x8xf32> -> vector<8x8xf32>
    %cst_22 = arith.constant 2.500000e-01 : f32
    %56 = vector.broadcast %cst_22 : f32 to vector<8x8xf32>
    %57 = arith.mulf %55, %56 : vector<8x8xf32>
    %58 = arith.addf %57, %33 : vector<8x8xf32>
    %cst_23 = arith.constant dense<0xFF800000> : vector<8xf32>
    %59 = vector.multi_reduction <maximumf>, %58, %cst_23 [1] : vector<8x8xf32> to vector<8xf32>
    %60 = vector.shape_cast %59 : vector<8xf32> to vector<8x1xf32>
    %61 = vector.broadcast %60 : vector<8x1xf32> to vector<8x8xf32>
    %62 = arith.subf %58, %61 : vector<8x8xf32>
    %63 = math.exp %62 : vector<8x8xf32>
    %cst_24 = arith.constant dense<0.000000e+00> : vector<8xf32>
    %64 = vector.multi_reduction <add>, %63, %cst_24 [1] : vector<8x8xf32> to vector<8xf32>
    %65 = vector.shape_cast %64 : vector<8xf32> to vector<8x1xf32>
    %66 = tpu.reciprocal %65 {approx = true} : vector<8x1xf32> -> vector<8x1xf32>
    %67 = vector.broadcast %66 : vector<8x1xf32> to vector<8x8xf32>
    %68 = arith.mulf %63, %67 : vector<8x8xf32>
    %69 = arith.truncf %68 : vector<8x8xf32> to vector<8x8xbf16>
    %70 = vector.extract_strided_slice %25 {offsets = [0, 16], sizes = [8, 16], strides = [1, 1]} : vector<8x32xbf16> to vector<8x16xbf16>
    %cst_25 = arith.constant dense<0.000000e+00> : vector<8x16xf32>
    %71 = tpu.matmul %69, %70, %cst_25 {dimension_numbers = #tpu.dot_dimension_numbers<[1], [0], [0], [1], [0, 0, 1, 1], [], []>} : vector<8x8xbf16>, vector<8x16xbf16>, vector<8x16xf32> -> vector<8x16xf32>
    %72 = tpu.concatenate %52, %71 in 1 : vector<8x16xf32>, vector<8x16xf32> -> vector<8x32xf32>
    %73 = arith.truncf %72 : vector<8x32xf32> to vector<8x32xbf16>
    %cst_26 = arith.constant dense<0.000000e+00> : vector<8x32xf32>
    %74 = tpu.matmul %73, %21, %cst_26 {dimension_numbers = #tpu.dot_dimension_numbers<[1], [0], [0], [1], [0, 0, 1, 1], [], []>} : vector<8x32xbf16>, vector<32x32xbf16>, vector<8x32xf32> -> vector<8x32xf32>
    %75 = vector.broadcast %22 : vector<1x32xf32> to vector<8x32xf32>
    %76 = arith.addf %74, %75 : vector<8x32xf32>
    %77 = arith.addf %1, %76 : vector<8x32xf32>
    %c0_27 = arith.constant 0 : index
    %c0_28 = arith.constant 0 : index
    %78 = vector.load %arg8[%c0_27, %c0_28] : memref<1x32xf32, #tpu.memory_space<vmem>>, vector<1x32xf32>
    %c0_29 = arith.constant 0 : index
    %c0_30 = arith.constant 0 : index
    %79 = vector.load %arg9[%c0_29, %c0_30] : memref<1x32xf32, #tpu.memory_space<vmem>>, vector<1x32xf32>
    %cst_31 = arith.constant dense<0.000000e+00> : vector<8xf32>
    %80 = vector.multi_reduction <add>, %77, %cst_31 [1] : vector<8x32xf32> to vector<8xf32>
    %81 = vector.shape_cast %80 : vector<8xf32> to vector<8x1xf32>
    %cst_32 = arith.constant 3.200000e+01 : f32
    %82 = vector.broadcast %cst_32 : f32 to vector<8x1xf32>
    %83 = arith.divf %81, %82 : vector<8x1xf32>
    %84 = vector.broadcast %83 : vector<8x1xf32> to vector<8x32xf32>
    %85 = arith.subf %77, %84 : vector<8x32xf32>
    %86 = arith.mulf %85, %85 : vector<8x32xf32>
    %cst_33 = arith.constant dense<0.000000e+00> : vector<8xf32>
    %87 = vector.multi_reduction <add>, %86, %cst_33 [1] : vector<8x32xf32> to vector<8xf32>
    %88 = vector.shape_cast %87 : vector<8xf32> to vector<8x1xf32>
    %cst_34 = arith.constant 3.200000e+01 : f32
    %89 = vector.broadcast %cst_34 : f32 to vector<8x1xf32>
    %90 = arith.divf %88, %89 : vector<8x1xf32>
    %91 = vector.broadcast %83 : vector<8x1xf32> to vector<8x32xf32>
    %92 = arith.subf %77, %91 : vector<8x32xf32>
    %cst_35 = arith.constant 9.99999997E-7 : f32
    %93 = vector.broadcast %cst_35 : f32 to vector<8x1xf32>
    %94 = arith.addf %90, %93 : vector<8x1xf32>
    %95 = math.rsqrt %94 : vector<8x1xf32>
    %96 = vector.broadcast %95 : vector<8x1xf32> to vector<8x32xf32>
    %97 = arith.mulf %92, %96 : vector<8x32xf32>
    %98 = vector.broadcast %78 : vector<1x32xf32> to vector<8x32xf32>
    %99 = arith.mulf %97, %98 : vector<8x32xf32>
    %100 = vector.broadcast %79 : vector<1x32xf32> to vector<8x32xf32>
    %101 = arith.addf %99, %100 : vector<8x32xf32>
    %c0_36 = arith.constant 0 : index
    %c0_37 = arith.constant 0 : index
    %c0_38 = arith.constant 0 : index
    %102 = vector.load %arg10[%c0_36, %c0_37, %c0_38] : memref<1x8x32xf32, #tpu.memory_space<vmem>>, vector<1x8x32xf32>
    %103 = vector.shape_cast %102 : vector<1x8x32xf32> to vector<8x32xf32>
    %104 = vector.shape_cast %101 : vector<8x32xf32> to vector<1x8x32xf32>
    tpu.vector_store %arg10[%c0_36, %c0_37, %c0_38], %104 {strides = array<i32>} : memref<1x8x32xf32, #tpu.memory_space<vmem>>, vector<1x8x32xf32>,
    return
  }
  func.func @transform_0(%arg0: i32, %arg1: i32) -> (i32, i32, i32) {
    %c0_i32 = arith.constant 0 : i32
    %c0_i32_0 = arith.constant 0 : i32
    return %arg0, %arg1, %c0_i32 : i32, i32, i32
  }
  func.func @transform_1(%arg0: i32, %arg1: i32) -> (i32, i32, i32) {
    %c0_i32 = arith.constant 0 : i32
    %c0_i32_0 = arith.constant 0 : i32
    %c0_i32_1 = arith.constant 0 : i32
    return %arg0, %c0_i32, %c0_i32_0 : i32, i32, i32
  }
  func.func @transform_2(%arg0: i32, %arg1: i32) -> (i32, i32) {
    %c0_i32 = arith.constant 0 : i32
    %c0_i32_0 = arith.constant 0 : i32
    %c0_i32_1 = arith.constant 0 : i32
    return %c0_i32, %c0_i32_0 : i32, i32
  }
  func.func @transform_3(%arg0: i32, %arg1: i32) -> (i32, i32) {
    %c0_i32 = arith.constant 0 : i32
    %c0_i32_0 = arith.constant 0 : i32
    %c0_i32_1 = arith.constant 0 : i32
    return %c0_i32, %c0_i32_0 : i32, i32
  }
  func.func @transform_4(%arg0: i32, %arg1: i32) -> (i32, i32) {
    %c0_i32 = arith.constant 0 : i32
    %c0_i32_0 = arith.constant 0 : i32
    %c0_i32_1 = arith.constant 0 : i32
    return %c0_i32, %c0_i32_0 : i32, i32
  }
  func.func @transform_5(%arg0: i32, %arg1: i32) -> (i32, i32) {
    %c0_i32 = arith.constant 0 : i32
    %c0_i32_0 = arith.constant 0 : i32
    %c0_i32_1 = arith.constant 0 : i32
    return %c0_i32, %c0_i32_0 : i32, i32
  }
  func.func @transform_6(%arg0: i32, %arg1: i32) -> (i32, i32) {
    %c0_i32 = arith.constant 0 : i32
    %c0_i32_0 = arith.constant 0 : i32
    %c0_i32_1 = arith.constant 0 : i32
    return %c0_i32, %c0_i32_0 : i32, i32
  }
  func.func @transform_7(%arg0: i32, %arg1: i32) -> (i32, i32) {
    %c0_i32 = arith.constant 0 : i32
    %c0_i32_0 = arith.constant 0 : i32
    %c0_i32_1 = arith.constant 0 : i32
    return %c0_i32, %c0_i32_0 : i32, i32
  }
  func.func @transform_8(%arg0: i32, %arg1: i32) -> (i32, i32, i32) {
    %c0_i32 = arith.constant 0 : i32
    %c0_i32_0 = arith.constant 0 : i32
    return %arg0, %arg1, %c0_i32 : i32, i32, i32
  }
}

module attributes {stable_mosaic.version = 11 : i64} {
  func.func @_ffn_ln_pool_cls_kernel(%arg0: i32, %arg1: i32, %arg2: memref<1x8x32xf32, #tpu.memory_space<vmem>>, %arg3: memref<32x64xbf16, #tpu.memory_space<vmem>>, %arg4: memref<1x64xf32, #tpu.memory_space<vmem>>, %arg5: memref<64x32xbf16, #tpu.memory_space<vmem>>, %arg6: memref<1x32xf32, #tpu.memory_space<vmem>>, %arg7: memref<1x32xf32, #tpu.memory_space<vmem>>, %arg8: memref<1x32xf32, #tpu.memory_space<vmem>>, %arg9: memref<32x4xbf16, #tpu.memory_space<vmem>>, %arg10: memref<1x1x4xf32, #tpu.memory_space<vmem>>, %arg11: memref<8x32xf32, #tpu.memory_space<vmem>>) attributes {dimension_semantics = [#tpu.dimension_semantics<parallel>, #tpu.dimension_semantics<arbitrary>], iteration_bounds = array<i64: 2, 1>, scalar_prefetch = 0 : i64, scratch_operands = 1 : i64, tpu.core_type = #tpu.core_type<tc>, window_params = [{transform_indices = @transform_0, window_bounds = array<i64: 1, 8, 32>}, {transform_indices = @transform_1, window_bounds = array<i64: 32, 64>}, {transform_indices = @transform_2, window_bounds = array<i64: 1, 64>}, {transform_indices = @transform_3, window_bounds = array<i64: 64, 32>}, {pipeline_mode = #tpu.pipeline_mode<synchronous>, transform_indices = @transform_4, window_bounds = array<i64: 1, 32>}, {pipeline_mode = #tpu.pipeline_mode<synchronous>, transform_indices = @transform_5, window_bounds = array<i64: 1, 32>}, {pipeline_mode = #tpu.pipeline_mode<synchronous>, transform_indices = @transform_6, window_bounds = array<i64: 1, 32>}, {pipeline_mode = #tpu.pipeline_mode<synchronous>, transform_indices = @transform_7, window_bounds = array<i64: 32, 4>}, {transform_indices = @transform_8, window_bounds = array<i64: 1, 1, 4>}]} {
    %c0_i32 = arith.constant 0 : i32
    %0 = arith.cmpi eq, %arg1, %c0_i32 : i32
    %1 = arith.extui %0 : i1 to i32
    %c0_i32_0 = arith.constant 0 : i32
    %2 = arith.cmpi ne, %1, %c0_i32_0 : i32
    scf.if %2 {
      %cst_17 = arith.constant 0.000000e+00 : f32
      %22 = vector.broadcast %cst_17 : f32 to vector<8x32xf32>
      %c0_18 = arith.constant 0 : index
      %c0_19 = arith.constant 0 : index
      %23 = vector.load %arg11[%c0_18, %c0_19] : memref<8x32xf32, #tpu.memory_space<vmem>>, vector<8x32xf32>
      tpu.vector_store %arg11[%c0_18, %c0_19], %22 {strides = array<i32>} : memref<8x32xf32, #tpu.memory_space<vmem>>, vector<8x32xf32>,
    } else {
    }
    %c0 = arith.constant 0 : index
    %c0_1 = arith.constant 0 : index
    %c0_2 = arith.constant 0 : index
    %3 = vector.load %arg2[%c0, %c0_1, %c0_2] : memref<1x8x32xf32, #tpu.memory_space<vmem>>, vector<1x8x32xf32>
    %4 = vector.shape_cast %3 : vector<1x8x32xf32> to vector<8x32xf32>
    %c0_3 = arith.constant 0 : index
    %c0_4 = arith.constant 0 : index
    %5 = vector.load %arg3[%c0_3, %c0_4] : memref<32x64xbf16, #tpu.memory_space<vmem>>, vector<32x64xbf16>
    %6 = arith.truncf %4 : vector<8x32xf32> to vector<8x32xbf16>
    %cst = arith.constant dense<0.000000e+00> : vector<8x64xf32>
    %7 = tpu.matmul %6, %5, %cst {dimension_numbers = #tpu.dot_dimension_numbers<[1], [0], [0], [1], [0, 0, 1, 1], [], []>} : vector<8x32xbf16>, vector<32x64xbf16>, vector<8x64xf32> -> vector<8x64xf32>
    %c0_5 = arith.constant 0 : index
    %c0_6 = arith.constant 0 : index
    %8 = vector.load %arg4[%c0_5, %c0_6] : memref<1x64xf32, #tpu.memory_space<vmem>>, vector<1x64xf32>
    %9 = vector.broadcast %8 : vector<1x64xf32> to vector<8x64xf32>
    %10 = arith.addf %7, %9 : vector<8x64xf32>
    %cst_7 = arith.constant 0.000000e+00 : f32
    %11 = vector.broadcast %cst_7 : f32 to vector<8x64xf32>
    %12 = arith.maximumf %10, %11 : vector<8x64xf32>
    %c0_8 = arith.constant 0 : index
    %c0_9 = arith.constant 0 : index
    %13 = vector.load %arg5[%c0_8, %c0_9] : memref<64x32xbf16, #tpu.memory_space<vmem>>, vector<64x32xbf16>
    %c0_10 = arith.constant 0 : index
    %c0_11 = arith.constant 0 : index
    %14 = vector.load %arg11[%c0_10, %c0_11] : memref<8x32xf32, #tpu.memory_space<vmem>>, vector<8x32xf32>
    %15 = arith.truncf %12 : vector<8x64xf32> to vector<8x64xbf16>
    %cst_12 = arith.constant dense<0.000000e+00> : vector<8x32xf32>
    %16 = tpu.matmul %15, %13, %cst_12 {dimension_numbers = #tpu.dot_dimension_numbers<[1], [0], [0], [1], [0, 0, 1, 1], [], []>} : vector<8x64xbf16>, vector<64x32xbf16>, vector<8x32xf32> -> vector<8x32xf32>
    %17 = arith.addf %14, %16 : vector<8x32xf32>
    %c0_13 = arith.constant 0 : index
    %c0_14 = arith.constant 0 : index
    %18 = vector.load %arg11[%c0_13, %c0_14] : memref<8x32xf32, #tpu.memory_space<vmem>>, vector<8x32xf32>
    tpu.vector_store %arg11[%c0_13, %c0_14], %17 {strides = array<i32>} : memref<8x32xf32, #tpu.memory_space<vmem>>, vector<8x32xf32>,
    %c0_i32_15 = arith.constant 0 : i32
    %19 = arith.cmpi eq, %arg1, %c0_i32_15 : i32
    %20 = arith.extui %19 : i1 to i32
    %c0_i32_16 = arith.constant 0 : i32
    %21 = arith.cmpi ne, %20, %c0_i32_16 : i32
    scf.if %21 {
      %c0_17 = arith.constant 0 : index
      %c0_18 = arith.constant 0 : index
      %22 = vector.load %arg11[%c0_17, %c0_18] : memref<8x32xf32, #tpu.memory_space<vmem>>, vector<8x32xf32>
      %23 = arith.addf %4, %22 : vector<8x32xf32>
      %c0_19 = arith.constant 0 : index
      %c0_20 = arith.constant 0 : index
      %24 = vector.load %arg6[%c0_19, %c0_20] : memref<1x32xf32, #tpu.memory_space<vmem>>, vector<1x32xf32>
      %25 = vector.broadcast %24 : vector<1x32xf32> to vector<8x32xf32>
      %26 = arith.addf %23, %25 : vector<8x32xf32>
      %c0_21 = arith.constant 0 : index
      %c0_22 = arith.constant 0 : index
      %27 = vector.load %arg7[%c0_21, %c0_22] : memref<1x32xf32, #tpu.memory_space<vmem>>, vector<1x32xf32>
      %c0_23 = arith.constant 0 : index
      %c0_24 = arith.constant 0 : index
      %28 = vector.load %arg8[%c0_23, %c0_24] : memref<1x32xf32, #tpu.memory_space<vmem>>, vector<1x32xf32>
      %cst_25 = arith.constant dense<0.000000e+00> : vector<8xf32>
      %29 = vector.multi_reduction <add>, %26, %cst_25 [1] : vector<8x32xf32> to vector<8xf32>
      %30 = vector.shape_cast %29 : vector<8xf32> to vector<8x1xf32>
      %cst_26 = arith.constant 3.200000e+01 : f32
      %31 = vector.broadcast %cst_26 : f32 to vector<8x1xf32>
      %32 = arith.divf %30, %31 : vector<8x1xf32>
      %33 = vector.broadcast %32 : vector<8x1xf32> to vector<8x32xf32>
      %34 = arith.subf %26, %33 : vector<8x32xf32>
      %35 = arith.mulf %34, %34 : vector<8x32xf32>
      %cst_27 = arith.constant dense<0.000000e+00> : vector<8xf32>
      %36 = vector.multi_reduction <add>, %35, %cst_27 [1] : vector<8x32xf32> to vector<8xf32>
      %37 = vector.shape_cast %36 : vector<8xf32> to vector<8x1xf32>
      %cst_28 = arith.constant 3.200000e+01 : f32
      %38 = vector.broadcast %cst_28 : f32 to vector<8x1xf32>
      %39 = arith.divf %37, %38 : vector<8x1xf32>
      %40 = vector.broadcast %32 : vector<8x1xf32> to vector<8x32xf32>
      %41 = arith.subf %26, %40 : vector<8x32xf32>
      %cst_29 = arith.constant 9.99999997E-7 : f32
      %42 = vector.broadcast %cst_29 : f32 to vector<8x1xf32>
      %43 = arith.addf %39, %42 : vector<8x1xf32>
      %44 = math.rsqrt %43 : vector<8x1xf32>
      %45 = vector.broadcast %44 : vector<8x1xf32> to vector<8x32xf32>
      %46 = arith.mulf %41, %45 : vector<8x32xf32>
      %47 = vector.broadcast %27 : vector<1x32xf32> to vector<8x32xf32>
      %48 = arith.mulf %46, %47 : vector<8x32xf32>
      %49 = vector.broadcast %28 : vector<1x32xf32> to vector<8x32xf32>
      %50 = arith.addf %48, %49 : vector<8x32xf32>
      %cst_30 = arith.constant dense<0xFF800000> : vector<32xf32>
      %51 = vector.multi_reduction <maximumf>, %50, %cst_30 [0] : vector<8x32xf32> to vector<32xf32>
      %52 = vector.shape_cast %51 : vector<32xf32> to vector<1x32xf32>
      %c0_31 = arith.constant 0 : index
      %c0_32 = arith.constant 0 : index
      %53 = vector.load %arg9[%c0_31, %c0_32] : memref<32x4xbf16, #tpu.memory_space<vmem>>, vector<32x4xbf16>
      %54 = arith.truncf %52 : vector<1x32xf32> to vector<1x32xbf16>
      %cst_33 = arith.constant dense<0.000000e+00> : vector<1x4xf32>
      %55 = tpu.matmul %54, %53, %cst_33 {dimension_numbers = #tpu.dot_dimension_numbers<[1], [0], [0], [1], [0, 0, 1, 1], [], []>} : vector<1x32xbf16>, vector<32x4xbf16>, vector<1x4xf32> -> vector<1x4xf32>
      %c0_34 = arith.constant 0 : index
      %c0_35 = arith.constant 0 : index
      %c0_36 = arith.constant 0 : index
      %56 = vector.load %arg10[%c0_34, %c0_35, %c0_36] : memref<1x1x4xf32, #tpu.memory_space<vmem>>, vector<1x1x4xf32>
      %57 = vector.shape_cast %56 : vector<1x1x4xf32> to vector<1x4xf32>
      %58 = vector.shape_cast %55 : vector<1x4xf32> to vector<1x1x4xf32>
      tpu.vector_store %arg10[%c0_34, %c0_35, %c0_36], %58 {strides = array<i32>} : memref<1x1x4xf32, #tpu.memory_space<vmem>>, vector<1x1x4xf32>,
    } else {
    }
    return
  }
  func.func @transform_0(%arg0: i32, %arg1: i32) -> (i32, i32, i32) {
    %c0_i32 = arith.constant 0 : i32
    %c0_i32_0 = arith.constant 0 : i32
    %c0_i32_1 = arith.constant 0 : i32
    return %arg0, %c0_i32, %c0_i32_0 : i32, i32, i32
  }
  func.func @transform_1(%arg0: i32, %arg1: i32) -> (i32, i32) {
    %c0_i32 = arith.constant 0 : i32
    %c0_i32_0 = arith.constant 0 : i32
    return %c0_i32, %arg1 : i32, i32
  }
  func.func @transform_2(%arg0: i32, %arg1: i32) -> (i32, i32) {
    %c0_i32 = arith.constant 0 : i32
    %c0_i32_0 = arith.constant 0 : i32
    return %c0_i32, %arg1 : i32, i32
  }
  func.func @transform_3(%arg0: i32, %arg1: i32) -> (i32, i32) {
    %c0_i32 = arith.constant 0 : i32
    %c0_i32_0 = arith.constant 0 : i32
    return %arg1, %c0_i32 : i32, i32
  }
  func.func @transform_4(%arg0: i32, %arg1: i32) -> (i32, i32) {
    %c0_i32 = arith.constant 0 : i32
    %c0_i32_0 = arith.constant 0 : i32
    %c0_i32_1 = arith.constant 0 : i32
    return %c0_i32, %c0_i32_0 : i32, i32
  }
  func.func @transform_5(%arg0: i32, %arg1: i32) -> (i32, i32) {
    %c0_i32 = arith.constant 0 : i32
    %c0_i32_0 = arith.constant 0 : i32
    %c0_i32_1 = arith.constant 0 : i32
    return %c0_i32, %c0_i32_0 : i32, i32
  }
  func.func @transform_6(%arg0: i32, %arg1: i32) -> (i32, i32) {
    %c0_i32 = arith.constant 0 : i32
    %c0_i32_0 = arith.constant 0 : i32
    %c0_i32_1 = arith.constant 0 : i32
    return %c0_i32, %c0_i32_0 : i32, i32
  }
  func.func @transform_7(%arg0: i32, %arg1: i32) -> (i32, i32) {
    %c0_i32 = arith.constant 0 : i32
    %c0_i32_0 = arith.constant 0 : i32
    %c0_i32_1 = arith.constant 0 : i32
    return %c0_i32, %c0_i32_0 : i32, i32
  }
  func.func @transform_8(%arg0: i32, %arg1: i32) -> (i32, i32, i32) {
    %c0_i32 = arith.constant 0 : i32
    %c0_i32_0 = arith.constant 0 : i32
    %c0_i32_1 = arith.constant 0 : i32
    return %arg0, %c0_i32, %c0_i32_0 : i32, i32, i32
  }
}

</mosaic_0001>

<bundles_post_ra>
// kernel: movie_classification_forward.11
= control target key start
LH: loop header
LB: loop body
LE: loop exit
PB: predicated region body
PF: predicated region fallthrough
CT: control target
= control target key end

     0   :  { %vm31_vm0 = vcmask 261120   ;;  %v310_v0 = vmov 0.0   ;;  %vm311_vm1 = vmmov 0   ;;  %vm142_vm2 = vcmask 523264   ;;  %s405_s1 = inlined_call_operand.vmem [shape: bf16[32,64], index: 1, kind: input, shape index: {}]   ;;  %s406_s0 = inlined_call_operand.vmem [shape: f32[16,32], index: 0, kind: input, shape index: {}]   ;;  %s407_s3 = inlined_call_operand.vmem [shape: bf16[64,32], index: 3, kind: input, shape index: {}]   ;;  %s408_s2 = inlined_call_operand.vmem [shape: f32[1,64], index: 2, kind: input, shape index: {}]   ;;  %s409_s4 = inlined_call_operand.vmem [shape: f32[1,32], index: 4, kind: input, shape index: {}]   ;;  %s410_s5 = inlined_call_operand.vmem [shape: f32[1,32], index: 5, kind: input, shape index: {}]   ;;  %s411_s6 = inlined_call_operand.vmem [shape: f32[1,32], index: 6, kind: input, shape index: {}]   ;;  %s412_s7 = inlined_call_operand.vmem [shape: f32[16,32], index: 7, kind: output, shape index: {}]  }
   0x1   :  { %278 = vmatprep.subr.bf16.mxu0 %v310_v0  ;;  %v300_v1 = vld [vmem:[%s405_s1] sm:$0xff]   ;;  %282 = vmatprep.mubr.msk.bf16.mxu0 %vm311_vm1, %v310_v0  ;;  %32 = vst.msk [vmem:[#allocation2] sm:$0xff] %vm31_vm0, %v310_v0  ;;  %33 = vst.msk [vmem:[#allocation2 + $0x8] sm:$0xff] %vm31_vm0, %v310_v0  ;;  %v301_v2 = vld [vmem:[%s405_s1 + $0x8] sm:$0xff]  }
   0x2   :  { %286 = vmatprep.subr.bf16.mxu1 %v310_v0  ;;  %294 = vmatprep.mubr.msk.bf16.mxu1 %vm311_vm1, %v310_v0  ;;  %v34_v3 = vld [vmem:[%s406_s0] sm:$0xff]  ;;  %v35_v4 = vld [vmem:[%s406_s0 + $0x8] sm:$0xff]  ;;  %v304_v8 = vld [vmem:[%s407_s3 + $0x10] sm:$0xff]  }
   0x3   :  { %279 = vmatpush3.bf16.msra.mxu0 %v300_v1  ;;  %v302_v5 = vld [vmem:[%s407_s3] sm:$0xff]   ;;  %v303_v6 = vld [vmem:[%s407_s3 + $0x8] sm:$0xff]   ;;  %v40_v7 = vpack.c.bf16 %v35_v4, %v34_v3  ;;  %v305_v9 = vld [vmem:[%s407_s3 + $0x18] sm:$0xff]  }
   0x4   :  { %280 = vmatprep.subr.bf16.mxu0 %v310_v0  ;;  %287 = vmatpush3.bf16.msra.mxu1 %v302_v5  ;;  %v258_v10 = vld [vmem:[%s408_s2] ss:$0 sm:$0xff] }
   0x5   :  { %288 = vmatprep.subr.bf16.mxu1 %v310_v0  ;;  %v267_v29 = vld [vmem:[%s409_s4] ss:$0 sm:$0xff] }
   0x6   :  { %v268_v54 = vld [vmem:[%s410_s5] ss:$0 sm:$0xff] }
   0x7   :  { %281 = vmatpush3.bf16.msra.mxu0 %v301_v2  ;;  %v269_v56 = vld [vmem:[%s411_s6] ss:$0 sm:$0xff] }
   0x8   :  { %289 = vmatpush3.bf16.msra.mxu1 %v303_v6  ;;  %v115_v20 = vld [vmem:[#allocation2] sm:$0xff]  ;;  %v116_v22 = vld [vmem:[#allocation2 + $0x8] sm:$0xff] }
   0x9   :  { %290 = vmatprep.subr.bf16.mxu1 %v310_v0 }
   0xa   :  { %283 = vmatmul.mubr.msk.bf16.vlgmr.msra.gmra.mrb[0].mxu0 %vm31_vm0, %v40_v7 }
   0xc   :  { %291 = vmatpush3.bf16.msra.mxu1 %v304_v8 }
   0xd   :  { %292 = vmatprep.subr.bf16.mxu1 %v310_v0 }
  0x10   :  { %293 = vmatpush3.bf16.msra.mxu1 %v305_v9 }
  0xdd   :  { %v98_v11 = vpop.f32.mrb[0].mxu0 }
  0xde   :  { %v99_v12 = vadd.f32 %v258_v10, %v98_v11  ;;  %v284_v13 = vpop.f32.mrb[1].mxu0 }
  0xdf   :  { %v101_v14 = vpop.f32.mrb[2].mxu0 }
  0xe0   :  { %v102_v15 = vadd.f32 %v258_v10, %v101_v14  ;;  %v285_v16 = vpop.f32.mrb[3].mxu0  ;;  %v105_v17 = vmax.f32 %v99_v12, 0.0 }
  0xe2   :  { %v106_v18 = vmax.f32 %v102_v15, 0.0 }
  0xe4   :  { %v117_v19 = vpack.c.bf16 %v106_v18, %v105_v17 }
  0xe6   :  { %295 = vmatmul.mubr.msk.bf16.vlgmr.msra.gmra.mrb[0].mxu1 %vm142_vm2, %v117_v19 }
 0x1b9   :  { %v180_v21 = vpop.f32.mrb[0].mxu1 }
 0x1ba   :  { %v187_v23 = vadd.f32 %v180_v21, %v115_v20  ;;  %v296_v24 = vpop.f32.mrb[1].mxu1 }
 0x1bb   :  { %v183_v25 = vpop.f32.mrb[2].mxu1 }
 0x1bc   :  { %189 = vst.msk [vmem:[#allocation2] sm:$0xff] %vm31_vm0, %v187_v23  ;;  %v188_v26 = vadd.f32 %v183_v25, %v116_v22  ;;  %v297_v27 = vpop.f32.mrb[3].mxu1 }
 0x1be   :  { %190 = vst.msk [vmem:[#allocation2 + $0x8] sm:$0xff] %vm31_vm0, %v188_v26 }
 0x1c3   :  { %v194_v28 = vld [vmem:[#allocation2] sm:$0xff] }
 0x1c4   :  { %v196_v30 = vadd.f32 %v194_v28, %v34_v3 }
 0x1c5   :  { %v195_v31 = vld [vmem:[#allocation2 + $0x8] sm:$0xff] }
 0x1c6   :  { %v205_v32 = vadd.f32 %v267_v29, %v196_v30  ;;  %v197_v33 = vadd.f32 %v195_v31, %v35_v4 }
 0x1c8   :  { %v209_v34 = vsel %vm31_vm0, %v205_v32, 0.0  ;;  %v206_v35 = vadd.f32 %v267_v29, %v197_v33 }
 0x1c9   :  { %210 = vadd.xlane.f32.xlu0 %v209_v34 }
 0x1ca   :  { %v212_v36 = vsel %vm31_vm0, %v206_v35, 0.0 }
 0x1cd   :  { %213 = vadd.xlane.f32.xlu0 %v212_v36 }
 0x256   :  { %v211_v37 = vpop.xlane.xlu0 %210 }
 0x257   :  { %v216_v38 = vmul.f32 0.03125, %v211_v37 }
 0x259   :  { %v218_v39 = vsub.f32 %v205_v32, %v216_v38 }
 0x25a   :  { %v214_v40 = vpop.xlane.xlu0 %213 }
 0x25b   :  { %v217_v41 = vmul.f32 0.03125, %v214_v40  ;;  %v220_v42 = vmul.f32 %v218_v39, %v218_v39 }
 0x25d   :  { %v219_v43 = vsub.f32 %v206_v35, %v217_v41  ;;  %v222_v44 = vsel %vm31_vm0, %v220_v42, 0.0 }
 0x25e   :  { %223 = vadd.xlane.f32.xlu1 %v222_v44 }
 0x25f   :  { %v221_v45 = vmul.f32 %v219_v43, %v219_v43 }
 0x261   :  { %v225_v46 = vsel %vm31_vm0, %v221_v45, 0.0 }
 0x262   :  { %226 = vadd.xlane.f32.xlu1 %v225_v46 }
 0x2eb   :  { %v224_v47 = vpop.xlane.xlu1 %223 }
 0x2ec   :  { %v228_v48 = vmul.f32 0.03125, %v224_v47 }
 0x2ee   :  { %v230_v49 = vadd.f32 1e-06, %v228_v48 }
 0x2ef   :  { %v227_v50 = vpop.xlane.xlu1 %226 }
 0x2f0   :  { %306 = vrsqrt.f32 %v230_v49  ;;  %v229_v51 = vmul.f32 0.03125, %v227_v50 }
 0x2f2   :  { %v231_v52 = vadd.f32 1e-06, %v229_v51 }
 0x2f4   :  { %308 = vrsqrt.f32 %v231_v52 }
 0x2fa   :  { %v307_v53 = vpop.eup %306 }
 0x2fb   :  { %v234_v55 = vmul.f32 %v307_v53, %v218_v39 }
 0x2fd   :  { %v242_v57 = vmul.f32 %v268_v54, %v234_v55 }
 0x2fe   :  { %v309_v58 = vpop.eup %308 }
 0x2ff   :  { %v250_v59 = vadd.f32 %v269_v56, %v242_v57  ;;  %v235_v60 = vmul.f32 %v309_v58, %v219_v43 }
 0x301   :  { %252 = vst.msk [vmem:[%s412_s7] sm:$0xff] %vm31_vm0, %v250_v59  ;;  %v243_v61 = vmul.f32 %v268_v54, %v235_v60 }
 0x303   :  { %v251_v62 = vadd.f32 %v269_v56, %v243_v61 }
 0x305   :  { %253 = vst.msk [vmem:[%s412_s7 + $0x8] sm:$0xff] %vm31_vm0, %v251_v62 }

// kernel: movie_classification_forward.10
= control target key start
LH: loop header
LB: loop body
LE: loop exit
PB: predicated region body
PF: predicated region fallthrough
CT: control target
= control target key end

     0   :  { %s1097_s27 = smov 0   ;;  %s1099_s28 = smov 0   ;;  %s1212_s0 = inlined_call_operand.vmem [shape: f32[2,8,32], index: 0, kind: input, shape index: {}, may-alias: {0,1}]   ;;  %s1213_s1 = inlined_call_operand.vmem [shape: f32[2,8,32], index: 1, kind: input, shape index: {}, may-alias: {0,1}]   ;;  %s1214_s2 = inlined_call_operand.vmem [shape: bf16[32,96], index: 2, kind: input, shape index: {}]   ;;  %s1215_s3 = inlined_call_operand.vmem [shape: f32[1,96], index: 3, kind: input, shape index: {}]   ;;  %s1216_s4 = inlined_call_operand.vmem [shape: bf16[32,32], index: 4, kind: input, shape index: {}]   ;;  %s1217_s5 = inlined_call_operand.vmem [shape: f32[1,32], index: 5, kind: input, shape index: {}]   ;;  %s1218_s6 = inlined_call_operand.vmem [shape: f32[1,32], index: 6, kind: input, shape index: {}]   ;;  %s1219_s7 = inlined_call_operand.vmem [shape: f32[1,32], index: 7, kind: input, shape index: {}]   ;;  %s1220_s8 = inlined_call_operand.vmem [shape: f32[2,8,32], index: 8, kind: output, shape index: {}]  }
   0x1   :  { %s1101_s29 = smov 0  }
   0x2 LB: > { %s30_s30 = sadd.s32 1, %s1040_s28  ;;  %p892_p0 = scmp.ge.s32.totalorder %s1044_s29, 1  ;;  %s1044_s29 = sphi %s1101_s29, %s18_s29   ;;  %s1040_s28 = sphi %s1099_s28, %s1222_s28   ;;  %s1036_s27 = sphi %s1097_s27, %s1221_s27  }
   0x3   : > { %p32_p1 = scmp.ge.s32.totalorder %s30_s30, 2  ;;  %p289_p2 = scmp.lt.s32.totalorder %s1044_s29, 3 }
   0x5   : > { %s1224_s30 = smov (%p32_p1, %s30_s30), 0  ;;  %p290_p3 = pnand %p892_p0, %p289_p2 }
   0x6   : > { %v1008_v0 = vld [vmem:[%s1214_s2] sm:$0xff] (!%p290_p3)   ;;  %s1046_s11 = smov (!%p290_p3), 96   ;;  %v1009_v1 = vld [vmem:[%s1214_s2 + $0x8] sm:$0xff] (!%p290_p3)   ;;  %v1047_v2 = vmov (!%p290_p3), 0.0   ;;  %p331_p4 = scmp.lt.s32.totalorder (!%p290_p3), %s1036_s27, 1  ;;  %vm1048_vm0 = vmmov (!%p290_p3), 0  }
   0x7   : > { %293 = sbr.rel (%p290_p3) target bundleno = 1858 (0x742), region = 52  ;;  %421 = vrot.lane.b32.xlu0 (!%p290_p3), %v1008_v0, %s1046_s11  ;;  %938 = vmatprep.subr.bf16.mxu1 (!%p290_p3), %v1047_v2  ;;  %v896_v3 = vld [vmem:[%s1215_s3] ss:$0 sm:$0xff] (!%p290_p3)  ;;  %vm376_vm1 = vcmask (!%p290_p3), 261120   ;;  %s1049_s23 = smov (!%p290_p3), 112   ;;  %vm480_vm2 = vcmask (!%p290_p3), 130048  }
   0x8   : > { %930 = vmatprep.subr.bf16.mxu0 (!%p290_p3), %v1047_v2  ;;  %942 = vmatprep.mubr.msk.bf16.mxu1 (!%p290_p3), %vm1048_vm0, %v1047_v2  ;;  %vm528_vm3 = vcmask (!%p290_p3), 64512   ;;  %s1050_s24 = smov (!%p290_p3), 80   ;;  %vm547_vm4 = vcmask (!%p290_p3), 1043456   ;;  %v1010_v61 = vld [vmem:[%s1216_s4] sm:$0xff] (!%p290_p3)   ;;  %s1051_s10 = smov (!%p290_p3), 16  }
   0x9   : > { %931 = vmatpush3.bf16.msra.mxu0 (!%p290_p3), %v1008_v0  ;;  %934 = vmatprep.mubr.msk.bf16.mxu0 (!%p290_p3), %vm1048_vm0, %v1047_v2 }
   0xa   : > { %932 = vmatprep.subr.bf16.mxu0 (!%p290_p3), %v1047_v2  ;;  %427 = vrot.lane.b32.xlu1 (!%p290_p3), %v896_v3, %s1046_s11 }
   0xb   : > { %423 = vrot.lane.b32.xlu0 (!%p290_p3), %v1009_v1, %s1046_s11 }
   0xd   : > { %933 = vmatpush3.bf16.msra.mxu0 (!%p290_p3), %v1009_v1 }
   0xe   : > { %s1226_s27 = smov (!%p331_p4, %s1036_s27), 1  ;;  %946 = vmatprep.subr.bf16.mxu0 %v1047_v2 }
   0xf   : > { %s1134_s16 = sshll.u32 %s1226_s27, 3 }
  0x10   : > { %s337_s19 = scalar_lea.vmem %s1212_s0, %s1134_s16  ;;  %s341_s22 = scalar_lea.vmem %s1213_s1, %s1134_s16 }
  0x11   : > { %v1140_v4 = vld [vmem:[%s337_s19] sm:$0xff]  ;;  %s348_s20 = scalar_lea.vmem %s1220_s8, %s1134_s16 }
  0x12   : > { %v357_v5 = vpack.c.bf16 %v1140_v4, %v1140_v4  ;;  %v351_v7 = vld [vmem:[%s341_s22] sm:$0xff] }
  0x13   : > { %v420_v9 = vpack.c.bf16 %v351_v7, %v351_v7 }
  0x14   : > { %935 = vmatmul.mubr.msk.bf16.vlgmr.msra.gmra.mrb[0].mxu0 %vm376_vm1, %v357_v5 }
  0x15   : > { %948 = vmatprep.mubr.msk.bf16.mxu0 %vm1048_vm0, %v1047_v2 }
  0x79   : > { %v422_v6 = vpop.permute.xlu0 %421 }
  0x7a   : > { %939 = vmatpush3.bf16.msra.mxu1 %v422_v6 }
  0x7b   : > { %940 = vmatprep.subr.bf16.mxu1 %v1047_v2 }
  0x7c   : > { %v428_v16 = vpop.permute.xlu1 %427 }
  0x7d   : > { %v424_v8 = vpop.permute.xlu0 %423 }
  0x7e   : > { %941 = vmatpush3.bf16.msra.mxu1 %v424_v8 }
  0x7f   : > { %952 = vmatprep.subr.bf16.mxu1 %v1047_v2 }
  0x81   : > { %943 = vmatmul.mubr.msk.bf16.vlgmr.msra.gmra.mrb[0].mxu1 %vm376_vm1, %v420_v9 }
  0x82   : > { %954 = vmatprep.mubr.msk.bf16.mxu1 %vm1048_vm0, %v1047_v2 }
  0xe7   : > { %v414_v10 = vpop.f32.mrb[0].mxu0 }
  0xe8   : > { %v415_v11 = vadd.f32 %v896_v3, %v414_v10  ;;  %v936_v12 = vpop.f32.mrb[1].mxu0  ;;  %v1011_v3 = vld [vmem:[%s1216_s4 + $0x8] sm:$0xff]  }
  0xe9   : > { %v417_v13 = vpop.f32.mrb[2].mxu0 }
  0xea   : > { %v478_v14 = vpack.c.bf16 %v415_v11, %v415_v11  ;;  %v937_v15 = vpop.f32.mrb[3].mxu0 }
  0xec   : > { %592 = vrot.lane.b32.xlu0 %v478_v14, %s1049_s23 }
 0x154   : > { %v467_v17 = vpop.f32.mrb[0].mxu1 }
 0x155   : > { %v468_v18 = vadd.f32 %v467_v17, %v428_v16  ;;  %v944_v19 = vpop.f32.mrb[1].mxu1 }
 0x156   : > { %v470_v20 = vpop.f32.mrb[2].mxu1 }
 0x157   : > { %v479_v21 = vpack.c.bf16 %v468_v18, %v468_v18  ;;  %v945_v22 = vpop.f32.mrb[3].mxu1 }
 0x159   : > { %594 = vrot.lane.b32.xlu1 %v479_v21, %s1049_s23  ;;  %v485_v23 = vsel %vm480_vm2, %v479_v21, 0 }
 0x15a   : > { %947 = vmatpush3.bf16.xpose.msra.mxu0 %v485_v23 }
 0x15b   : > { %958 = vmatprep.subr.bf16.mxu0 %v1047_v2 }
 0x15e   : > { %v593_v26 = vpop.permute.xlu0 %592 }
 0x161   : > { %949 = vmatmul.mubr.msk.bf16.vlgmr.msra.gmra.mrb[4].mxu0 %vm480_vm2, %v478_v14 }
 0x162   : > { %960 = vmatprep.mubr.msk.bf16.mxu0 %vm1048_vm0, %v1047_v2 }
 0x1cb   : > { %v595_v24 = vpop.permute.xlu1 %594 }
 0x1cc   : > { %v600_v25 = vsel %vm480_vm2, %v595_v24, 0 }
 0x1cd   : > { %959 = vmatpush3.bf16.xpose.msra.mxu0 %v600_v25 }
 0x1ce   : > { %970 = vmatprep.subr.bf16.mxu0 %v1047_v2 }
 0x1d4   : > { %961 = vmatmul.mubr.msk.bf16.vlgmr.msra.gmra.mrb[8].mxu0 %vm480_vm2, %v593_v26 }
 0x1d5   : > { %974 = vmatprep.mubr.msk.bf16.mxu0 %vm1048_vm0, %v1047_v2  ;;  %971 = vmatpush3.bf16.msra.mxu0 %v1010_v61 }
 0x1d6   : > { %972 = vmatprep.subr.bf16.mxu0 %v1047_v2 }
 0x1d9   : > { %973 = vmatpush3.bf16.msra.mxu0 %v1011_v3 }
 0x234   : > { %v521_v27 = vpop.f32.mrb[4].mxu0 }
 0x235   : > { %v527_v28 = vmul.f32 0.25, %v521_v27  ;;  %v950_v29 = vpop.f32.mrb[5].mxu0 }
 0x236   : > { %v524_v30 = vpop.f32.mrb[6].mxu0  ;;  %v910_v29 = vld [vmem:[%s1219_s7] ss:$0 sm:$0xff] }
 0x237   : > { %v951_v31 = vpop.f32.mrb[7].mxu0  ;;  %v529_v32 = vsel %vm528_vm3, %v527_v28, -inf }
 0x238   : > { %530 = vmax.xlane.f32.xlu1 %v529_v32 }
 0x2a7   : > { %v636_v33 = vpop.f32.mrb[8].mxu0 }
 0x2a8   : > { %v642_v34 = vmul.f32 0.25, %v636_v33  ;;  %v962_v35 = vpop.f32.mrb[9].mxu0 }
 0x2a9   : > { %v639_v36 = vpop.f32.mrb[10].mxu0 }
 0x2aa   : > { %v963_v37 = vpop.f32.mrb[11].mxu0  ;;  %v643_v38 = vsel %vm528_vm3, %v642_v34, -inf }
 0x2ab   : > { %644 = vmax.xlane.f32.xlu0 %v643_v38 }
 0x2c5   : > { %v531_v39 = vpop.xlane.xlu1 %530 }
 0x2c6   : > { %v532_v40 = vsub.f32 %v527_v28, %v531_v39 }
 0x2c8   : > { %v533_v41 = vmul.f32 1.442695, %v532_v40 }
 0x2ca   : > { %1012 = vpow2.f32 %v533_v41 }
 0x2d4   : > { %v1013_v42 = vpop.eup %1012 }
 0x2d5   : > { %v535_v43 = vsel %vm528_vm3, %v1013_v42, 0.0 }
 0x2d6   : > { %536 = vadd.xlane.f32.xlu0 %v535_v43 }
 0x2ec   : > { %542 = vrot.lane.b32.xlu0 %v479_v21, %s1046_s11 }
 0x338   : > { %v645_v44 = vpop.xlane.xlu0 %644 }
 0x339   : > { %v646_v45 = vsub.f32 %v642_v34, %v645_v44 }
 0x33b   : > { %v647_v46 = vmul.f32 1.442695, %v646_v45 }
 0x33d   : > { %1014 = vpow2.f32 %v647_v46 }
 0x347   : > { %v1015_v47 = vpop.eup %1014 }
 0x348   : > { %v649_v48 = vsel %vm528_vm3, %v1015_v47, 0.0 }
 0x349   : > { %650 = vadd.xlane.f32.xlu1 %v649_v48 }
 0x35a   : > { %655 = vrot.lane.b32.xlu1 %v479_v21, %s1050_s24 }
 0x363   : > { %v537_v49 = vpop.xlane.xlu0 %536 }
 0x364   : > { %1016 = vrcp.f32 %v537_v49 }
 0x367   : > { %v543_v50 = vpop.permute.xlu0 %542 }
 0x368   : > { %v549_v51 = vsel %vm547_vm4, %v543_v50, 0 }
 0x369   : > { %953 = vmatpush3.bf16.msra.mxu1 %v549_v51 }
 0x36a   : > { %964 = vmatprep.subr.bf16.mxu1 %v1047_v2 }
 0x36e   : > { %v1017_v52 = vpop.eup %1016 }
 0x36f   : > { %v539_v53 = vmul.f32 %v1017_v52, %v1013_v42 }
 0x371   : > { %v540_v54 = vpack.c.bf16 %v539_v53, %v539_v53 }
 0x373   : > { %955 = vmatmul.mubr.msk.bf16.vlgmr.msra.gmra.mrb[4].mxu1 %vm528_vm3, %v540_v54 }
 0x374   : > { %966 = vmatprep.mubr.msk.bf16.mxu1 %vm1048_vm0, %v1047_v2  ;;  %v905_v2 = vld [vmem:[%s1217_s5] ss:$0 sm:$0xff] }
 0x3d6   : > { %v651_v55 = vpop.xlane.xlu1 %650 }
 0x3d7   : > { %1018 = vrcp.f32 %v651_v55 }
 0x3da   : > { %v656_v56 = vpop.permute.xlu1 %655 }
 0x3db   : > { %v661_v57 = vsel %vm547_vm4, %v656_v56, 0 }
 0x3dc   : > { %965 = vmatpush3.bf16.msra.mxu1 %v661_v57 }
 0x3e1   : > { %v1019_v58 = vpop.eup %1018 }
 0x3e2   : > { %v653_v59 = vmul.f32 %v1019_v58, %v1015_v47 }
 0x3e4   : > { %v654_v60 = vpack.c.bf16 %v653_v59, %v653_v59 }
 0x3e6   : > { %967 = vmatmul.mubr.msk.bf16.vlgmr.msra.gmra.mrb[8].mxu1 %vm528_vm3, %v654_v60 }
 0x446   : > { %v585_v62 = vpop.f32.mrb[4].mxu1 }
 0x447   : > { %v956_v63 = vpop.f32.mrb[5].mxu1 }
 0x448   : > { %v588_v0 = vpop.f32.mrb[6].mxu1 }
 0x449   : > { %v957_v1 = vpop.f32.mrb[7].mxu1 }
 0x4b9   : > { %v697_v5 = vpop.f32.mrb[8].mxu1 }
 0x4ba   : > { %704 = vrot.lane.b32.xlu1 %v697_v5, %s1051_s10  ;;  %v968_v6 = vpop.f32.mrb[9].mxu1 }
 0x4bb   : > { %v700_v7 = vpop.f32.mrb[10].mxu1 }
 0x4bc   : > { %v969_v8 = vpop.f32.mrb[11].mxu1 }
 0x52c   : > { %v705_v9 = vpop.permute.xlu1 %704 }
 0x52d   : > { %v707_v10 = vsel %vm480_vm2, %v585_v62, %v705_v9 }
 0x52e   : > { %v708_v11 = vpack.c.bf16 %v707_v10, %v707_v10 }
 0x530   : > { %975 = vmatmul.mubr.msk.bf16.vlgmr.msra.gmra.mrb[12].mxu0 %vm376_vm1, %v708_v11 }
 0x603   : > { %v764_v12 = vpop.f32.mrb[12].mxu0 }
 0x604   : > { %v765_v13 = vadd.f32 %v905_v2, %v764_v12  ;;  %v976_v14 = vpop.f32.mrb[13].mxu0 }
 0x605   : > { %v767_v15 = vpop.f32.mrb[14].mxu0 }
 0x606   : > { %v977_v16 = vpop.f32.mrb[15].mxu0  ;;  %v770_v17 = vadd.f32 %v765_v13, %v1140_v4  ;;  %v909_v4 = vld [vmem:[%s1218_s6] ss:$0 sm:$0xff] }
 0x608   : > { %v773_v18 = vsel %vm376_vm1, %v770_v17, 0.0 }
 0x609   : > { %774 = vadd.xlane.f32.xlu0 %v773_v18 }
 0x696   : > { %v775_v19 = vpop.xlane.xlu0 %774 }
 0x697   : > { %v777_v20 = vmul.f32 0.03125, %v775_v19 }
 0x699   : > { %v778_v21 = vsub.f32 %v770_v17, %v777_v20 }
 0x69b   : > { %v779_v22 = vmul.f32 %v778_v21, %v778_v21 }
 0x69d   : > { %v780_v23 = vsel %vm376_vm1, %v779_v22, 0.0 }
 0x69e   : > { %781 = vadd.xlane.f32.xlu1 %v780_v23 }
 0x72b   : > { %v782_v24 = vpop.xlane.xlu1 %781 }
 0x72c   : > { %v783_v25 = vmul.f32 0.03125, %v782_v24 }
 0x72e   : > { %v784_v26 = vadd.f32 1e-06, %v783_v25 }
 0x730   : > { %1020 = vrsqrt.f32 %v784_v26 }
 0x73a   : > { %v1021_v27 = vpop.eup %1020 }
 0x73b   : > { %v786_v28 = vmul.f32 %v1021_v27, %v778_v21 }
 0x73d   : > { %v793_v30 = vmul.f32 %v909_v4, %v786_v28 }
 0x73f   : > { %v800_v31 = vadd.f32 %v910_v29, %v793_v30 }
 0x741   : > { %801 = vst.msk [vmem:[%s348_s20] sm:$0xff] %vm376_vm1, %v800_v31 }
 0x742 PF: > { %s18_s29 = sadd.s32 1, %s1044_s29   ;;  %s1221_s27 = smov %s1040_s28 }
 0x743   : > { %p15_p5 = scmp.ge.s32.totalorder %s18_s29, 4   ;;  %s1222_s28 = smov %s1224_s30 }
 0x745   :  { %17 = sbr.rel (!%p15_p5) target bundleno = 2 (0x2), region = 85 }

// kernel: movie_classification_forward.15
= control target key start
LH: loop header
LB: loop body
LE: loop exit
PB: predicated region body
PF: predicated region fallthrough
CT: control target
= control target key end

     0   :  { %s1180_s13 = smov 0   ;;  %s1182_s14 = smov 0   ;;  %s1302_s0 = inlined_call_operand.vmem [shape: f32[2,8,32], index: 0, kind: input, shape index: {}]   ;;  %s1303_s1 = inlined_call_operand.vmem [shape: f32[2,8,32], index: 1, kind: input, shape index: {}]   ;;  %s1304_s2 = inlined_call_operand.vmem [shape: bf16[32,32], index: 2, kind: input, shape index: {}]   ;;  %s1305_s3 = inlined_call_operand.vmem [shape: f32[1,32], index: 3, kind: input, shape index: {}]   ;;  %s1306_s4 = inlined_call_operand.vmem [shape: bf16[32,64], index: 4, kind: input, shape index: {}]   ;;  %s1307_s5 = inlined_call_operand.vmem [shape: f32[1,64], index: 5, kind: input, shape index: {}]   ;;  %s1308_s6 = inlined_call_operand.vmem [shape: bf16[32,32], index: 6, kind: input, shape index: {}]   ;;  %s1309_s7 = inlined_call_operand.vmem [shape: f32[1,32], index: 7, kind: input, shape index: {}]   ;;  %s1310_s8 = inlined_call_operand.vmem [shape: f32[1,32], index: 8, kind: input, shape index: {}]   ;;  %s1311_s9 = inlined_call_operand.vmem [shape: f32[1,32], index: 9, kind: input, shape index: {}]   ;;  %s1312_s10 = inlined_call_operand.vmem [shape: f32[2,8,32], index: 10, kind: output, shape index: {}]  }
   0x1   :  { %s1184_s15 = smov 0  }
   0x2 LB: > { %s32_s16 = sadd.s32 1, %s1113_s14  ;;  %p960_p0 = scmp.ge.s32.totalorder %s1117_s15, 1  ;;  %s1117_s15 = sphi %s1184_s15, %s20_s15   ;;  %s1113_s14 = sphi %s1182_s14, %s1314_s14   ;;  %s1109_s13 = sphi %s1180_s13, %s1313_s13  }
   0x3   : > { %p34_p1 = scmp.ge.s32.totalorder %s32_s16, 2  ;;  %p339_p2 = scmp.lt.s32.totalorder %s1117_s15, 3 }
   0x5   : > { %s1316_s16 = smov (%p34_p1, %s32_s16), 0  ;;  %p340_p3 = pnand %p960_p0, %p339_p2 }
   0x6   : > { %v1079_v0 = vld [vmem:[%s1306_s4] sm:$0xff] (!%p340_p3)   ;;  %v1119_v1 = vmov (!%p340_p3), 0.0   ;;  %v1080_v2 = vld [vmem:[%s1306_s4 + $0x8] sm:$0xff] (!%p340_p3)   ;;  %vm1120_vm0 = vmmov (!%p340_p3), 0   ;;  %p385_p4 = scmp.lt.s32.totalorder (!%p340_p3), %s1109_s13, 1  ;;  %vm430_vm1 = vcmask (!%p340_p3), 261120  }
   0x7   : > { %343 = sbr.rel (%p340_p3) target bundleno = 1749 (0x6d5), region = 60  ;;  %1009 = vmatprep.subr.bf16.mxu1 (!%p340_p3), %v1119_v1  ;;  %1001 = vmatprep.subr.bf16.mxu0 (!%p340_p3), %v1119_v1  ;;  %v1081_v3 = vld [vmem:[%s1304_s2] sm:$0xff] (!%p340_p3)   ;;  %v1082_v4 = vld [vmem:[%s1304_s2 + $0x8] sm:$0xff] (!%p340_p3)   ;;  %vm548_vm2 = vcmask (!%p340_p3), 130048   ;;  %s1121_s19 = smov (!%p340_p3), 112   ;;  %vm596_vm3 = vcmask (!%p340_p3), 64512  }
   0x8   : > { %1010 = vmatpush3.bf16.msra.mxu1 (!%p340_p3), %v1079_v0  ;;  %1013 = vmatprep.mubr.msk.bf16.mxu1 (!%p340_p3), %vm1120_vm0, %v1119_v1  ;;  %v968_v9 = vld [vmem:[%s1307_s5] ss:$0 sm:$0xff] (!%p340_p3)  ;;  %s1122_s20 = smov (!%p340_p3), 96   ;;  %vm615_vm4 = vcmask (!%p340_p3), 1043456   ;;  %s1123_s21 = smov (!%p340_p3), 80  }
   0x9   : > { %1011 = vmatprep.subr.bf16.mxu1 (!%p340_p3), %v1119_v1  ;;  %1005 = vmatprep.mubr.msk.bf16.mxu0 (!%p340_p3), %vm1120_vm0, %v1119_v1  ;;  %v964_v10 = vld [vmem:[%s1305_s3] ss:$0 sm:$0xff] (!%p340_p3)  ;;  %s1124_s27 = smov (!%p340_p3), 16  }
   0xa   : > { %1002 = vmatpush3.bf16.msra.mxu0 (!%p340_p3), %v1081_v3  ;;  %v1083_v61 = vld [vmem:[%s1308_s6] sm:$0xff] (!%p340_p3)   ;;  %v1084_v3 = vld [vmem:[%s1308_s6 + $0x8] sm:$0xff] (!%p340_p3)  }
   0xb   : > { %1003 = vmatprep.subr.bf16.mxu0 (!%p340_p3), %v1119_v1 }
   0xc   : > { %1012 = vmatpush3.bf16.msra.mxu1 (!%p340_p3), %v1080_v2 }
   0xd   : > { %1023 = vmatprep.subr.bf16.mxu1 (!%p340_p3), %v1119_v1 }
   0xe   : > { %s1318_s13 = smov (!%p385_p4, %s1109_s13), 1  ;;  %1004 = vmatpush3.bf16.msra.mxu0 %v1082_v4 }
   0xf   : > { %s1218_s25 = sshll.u32 %s1318_s13, 3  ;;  %1017 = vmatprep.subr.bf16.mxu0 %v1119_v1 }
  0x10   : > { %s395_s28 = scalar_lea.vmem %s1303_s1, %s1218_s25  ;;  %s391_s11 = scalar_lea.vmem %s1302_s0, %s1218_s25 }
  0x11   : > { %v405_v5 = vld [vmem:[%s395_s28] sm:$0xff] }
  0x12   : > { %v478_v6 = vpack.c.bf16 %v405_v5, %v405_v5  ;;  %v1229_v7 = vld [vmem:[%s391_s11] sm:$0xff] }
  0x13   : > { %v410_v8 = vpack.c.bf16 %v1229_v7, %v1229_v7 }
  0x14   : > { %1014 = vmatmul.mubr.msk.bf16.vlgmr.msra.gmra.mrb[0].mxu1 %vm430_vm1, %v478_v6 }
  0x15   : > { %1006 = vmatmul.mubr.msk.bf16.vlgmr.msra.gmra.mrb[0].mxu0 %vm430_vm1, %v410_v8  ;;  %1025 = vmatprep.mubr.msk.bf16.mxu1 %vm1120_vm0, %v1119_v1 }
  0x16   : > { %1019 = vmatprep.mubr.msk.bf16.mxu0 %vm1120_vm0, %v1119_v1 }
  0xe7   : > { %v535_v11 = vpop.f32.mrb[0].mxu1 }
  0xe8   : > { %v536_v12 = vadd.f32 %v968_v9, %v535_v11  ;;  %v1015_v13 = vpop.f32.mrb[1].mxu1  ;;  %v468_v14 = vpop.f32.mrb[0].mxu0 }
  0xe9   : > { %v538_v15 = vpop.f32.mrb[2].mxu1  ;;  %v469_v16 = vadd.f32 %v964_v10, %v468_v14  ;;  %v1007_v17 = vpop.f32.mrb[1].mxu0 }
  0xea   : > { %v547_v18 = vpack.c.bf16 %v536_v12, %v536_v12  ;;  %v1016_v19 = vpop.f32.mrb[3].mxu1  ;;  %v471_v20 = vpop.f32.mrb[2].mxu0 }
  0xeb   : > { %v1008_v21 = vpop.f32.mrb[3].mxu0  ;;  %v546_v22 = vpack.c.bf16 %v469_v16, %v469_v16 }
  0xec   : > { %662 = vrot.lane.b32.xlu0 %v547_v18, %s1121_s19  ;;  %v553_v23 = vsel %vm548_vm2, %v547_v18, 0 }
  0xed   : > { %1018 = vmatpush3.bf16.xpose.msra.mxu0 %v553_v23 }
  0xee   : > { %1029 = vmatprep.subr.bf16.mxu0 %v1119_v1 }
  0xf0   : > { %660 = vrot.lane.b32.xlu0 %v546_v22, %s1121_s19  ;;  %s402_s19 = scalar_lea.vmem %s1312_s10, %s1218_s25 }
  0xf4   : > { %1020 = vmatmul.mubr.msk.bf16.vlgmr.msra.gmra.mrb[4].mxu0 %vm548_vm2, %v546_v22 }
  0xf5   : > { %1031 = vmatprep.mubr.msk.bf16.mxu0 %vm1120_vm0, %v1119_v1 }
 0x15e   : > { %v663_v24 = vpop.permute.xlu0 %662 }
 0x15f   : > { %v668_v25 = vsel %vm548_vm2, %v663_v24, 0 }
 0x160   : > { %1030 = vmatpush3.bf16.xpose.msra.mxu0 %v668_v25 }
 0x161   : > { %1041 = vmatprep.subr.bf16.mxu0 %v1119_v1 }
 0x162   : > { %v661_v26 = vpop.permute.xlu0 %660 }
 0x167   : > { %1032 = vmatmul.mubr.msk.bf16.vlgmr.msra.gmra.mrb[8].mxu0 %vm548_vm2, %v661_v26 }
 0x168   : > { %1045 = vmatprep.mubr.msk.bf16.mxu0 %vm1120_vm0, %v1119_v1  ;;  %1042 = vmatpush3.bf16.msra.mxu0 %v1083_v61 }
 0x169   : > { %1043 = vmatprep.subr.bf16.mxu0 %v1119_v1 }
 0x16c   : > { %1044 = vmatpush3.bf16.msra.mxu0 %v1084_v3 }
 0x1c7   : > { %v589_v27 = vpop.f32.mrb[4].mxu0 }
 0x1c8   : > { %v595_v28 = vmul.f32 0.25, %v589_v27  ;;  %v1021_v29 = vpop.f32.mrb[5].mxu0 }
 0x1c9   : > { %v592_v30 = vpop.f32.mrb[6].mxu0  ;;  %v981_v29 = vld [vmem:[%s1311_s9] ss:$0 sm:$0xff] }
 0x1ca   : > { %v1022_v31 = vpop.f32.mrb[7].mxu0  ;;  %v597_v32 = vsel %vm596_vm3, %v595_v28, -inf }
 0x1cb   : > { %598 = vmax.xlane.f32.xlu1 %v597_v32 }
 0x23a   : > { %v704_v33 = vpop.f32.mrb[8].mxu0 }
 0x23b   : > { %v710_v34 = vmul.f32 0.25, %v704_v33  ;;  %v1033_v35 = vpop.f32.mrb[9].mxu0 }
 0x23c   : > { %v707_v36 = vpop.f32.mrb[10].mxu0 }
 0x23d   : > { %v1034_v37 = vpop.f32.mrb[11].mxu0  ;;  %v711_v38 = vsel %vm596_vm3, %v710_v34, -inf }
 0x23e   : > { %712 = vmax.xlane.f32.xlu1 %v711_v38 }
 0x24f   : > { %610 = vrot.lane.b32.xlu1 %v547_v18, %s1122_s20 }
 0x258   : > { %v599_v39 = vpop.xlane.xlu1 %598 }
 0x259   : > { %v600_v40 = vsub.f32 %v595_v28, %v599_v39 }
 0x25b   : > { %v601_v41 = vmul.f32 1.442695, %v600_v40 }
 0x25d   : > { %1085 = vpow2.f32 %v601_v41 }
 0x267   : > { %v1086_v42 = vpop.eup %1085 }
 0x268   : > { %v603_v43 = vsel %vm596_vm3, %v1086_v42, 0.0 }
 0x269   : > { %604 = vadd.xlane.f32.xlu0 %v603_v43 }
 0x2cb   : > { %v713_v44 = vpop.xlane.xlu1 %712 }
 0x2cc   : > { %v714_v45 = vsub.f32 %v710_v34, %v713_v44 }
 0x2ce   : > { %v715_v46 = vmul.f32 1.442695, %v714_v45 }
 0x2cf   : > { %v611_v47 = vpop.permute.xlu1 %610 }
 0x2d0   : > { %1087 = vpow2.f32 %v715_v46  ;;  %v617_v48 = vsel %vm615_vm4, %v611_v47, 0 }
 0x2d1   : > { %1024 = vmatpush3.bf16.msra.mxu1 %v617_v48 }
 0x2d2   : > { %1035 = vmatprep.subr.bf16.mxu1 %v1119_v1 }
 0x2da   : > { %v1088_v49 = vpop.eup %1087 }
 0x2db   : > { %v717_v50 = vsel %vm596_vm3, %v1088_v49, 0.0 }
 0x2dc   : > { %718 = vadd.xlane.f32.xlu1 %v717_v50 }
 0x2ed   : > { %723 = vrot.lane.b32.xlu1 %v547_v18, %s1123_s21 }
 0x2f6   : > { %v605_v51 = vpop.xlane.xlu0 %604 }
 0x2f7   : > { %1089 = vrcp.f32 %v605_v51 }
 0x301   : > { %v1090_v52 = vpop.eup %1089 }
 0x302   : > { %v607_v53 = vmul.f32 %v1090_v52, %v1086_v42 }
 0x304   : > { %v608_v54 = vpack.c.bf16 %v607_v53, %v607_v53 }
 0x306   : > { %1026 = vmatmul.mubr.msk.bf16.vlgmr.msra.gmra.mrb[4].mxu1 %vm596_vm3, %v608_v54 }
 0x307   : > { %1037 = vmatprep.mubr.msk.bf16.mxu1 %vm1120_vm0, %v1119_v1  ;;  %v976_v1 = vld [vmem:[%s1309_s7] ss:$0 sm:$0xff] }
 0x369   : > { %v719_v55 = vpop.xlane.xlu1 %718 }
 0x36a   : > { %1091 = vrcp.f32 %v719_v55 }
 0x36d   : > { %v724_v56 = vpop.permute.xlu1 %723 }
 0x36e   : > { %v729_v57 = vsel %vm615_vm4, %v724_v56, 0 }
 0x36f   : > { %1036 = vmatpush3.bf16.msra.mxu1 %v729_v57 }
 0x374   : > { %v1092_v58 = vpop.eup %1091 }
 0x375   : > { %v721_v59 = vmul.f32 %v1092_v58, %v1088_v49 }
 0x377   : > { %v722_v60 = vpack.c.bf16 %v721_v59, %v721_v59 }
 0x379   : > { %1038 = vmatmul.mubr.msk.bf16.vlgmr.msra.gmra.mrb[8].mxu1 %vm596_vm3, %v722_v60 }
 0x3d9   : > { %v653_v62 = vpop.f32.mrb[4].mxu1 }
 0x3da   : > { %v1027_v63 = vpop.f32.mrb[5].mxu1 }
 0x3db   : > { %v656_v0 = vpop.f32.mrb[6].mxu1 }
 0x3dc   : > { %v1028_v2 = vpop.f32.mrb[7].mxu1 }
 0x44c   : > { %v765_v4 = vpop.f32.mrb[8].mxu1 }
 0x44d   : > { %772 = vrot.lane.b32.xlu1 %v765_v4, %s1124_s27  ;;  %v1039_v5 = vpop.f32.mrb[9].mxu1 }
 0x44e   : > { %v768_v6 = vpop.f32.mrb[10].mxu1 }
 0x44f   : > { %v1040_v8 = vpop.f32.mrb[11].mxu1 }
 0x4bf   : > { %v773_v9 = vpop.permute.xlu1 %772 }
 0x4c0   : > { %v775_v10 = vsel %vm548_vm2, %v653_v62, %v773_v9 }
 0x4c1   : > { %v776_v11 = vpack.c.bf16 %v775_v10, %v775_v10 }
 0x4c3   : > { %1046 = vmatmul.mubr.msk.bf16.vlgmr.msra.gmra.mrb[12].mxu0 %vm430_vm1, %v776_v11 }
 0x596   : > { %v832_v12 = vpop.f32.mrb[12].mxu0 }
 0x597   : > { %v833_v13 = vadd.f32 %v976_v1, %v832_v12  ;;  %v1047_v14 = vpop.f32.mrb[13].mxu0 }
 0x598   : > { %v835_v15 = vpop.f32.mrb[14].mxu0 }
 0x599   : > { %v1048_v16 = vpop.f32.mrb[15].mxu0  ;;  %v838_v17 = vadd.f32 %v833_v13, %v1229_v7  ;;  %v980_v7 = vld [vmem:[%s1310_s8] ss:$0 sm:$0xff] }
 0x59b   : > { %v841_v18 = vsel %vm430_vm1, %v838_v17, 0.0 }
 0x59c   : > { %842 = vadd.xlane.f32.xlu1 %v841_v18 }
 0x629   : > { %v843_v19 = vpop.xlane.xlu1 %842 }
 0x62a   : > { %v845_v20 = vmul.f32 0.03125, %v843_v19 }
 0x62c   : > { %v846_v21 = vsub.f32 %v838_v17, %v845_v20 }
 0x62e   : > { %v847_v22 = vmul.f32 %v846_v21, %v846_v21 }
 0x630   : > { %v848_v23 = vsel %vm430_vm1, %v847_v22, 0.0 }
 0x631   : > { %849 = vadd.xlane.f32.xlu0 %v848_v23 }
 0x6be   : > { %v850_v24 = vpop.xlane.xlu0 %849 }
 0x6bf   : > { %v851_v25 = vmul.f32 0.03125, %v850_v24 }
 0x6c1   : > { %v852_v26 = vadd.f32 1e-06, %v851_v25 }
 0x6c3   : > { %1093 = vrsqrt.f32 %v852_v26 }
 0x6cd   : > { %v1094_v27 = vpop.eup %1093 }
 0x6ce   : > { %v854_v28 = vmul.f32 %v1094_v27, %v846_v21 }
 0x6d0   : > { %v861_v30 = vmul.f32 %v980_v7, %v854_v28 }
 0x6d2   : > { %v868_v31 = vadd.f32 %v981_v29, %v861_v30 }
 0x6d4   : > { %869 = vst.msk [vmem:[%s402_s19] sm:$0xff] %vm430_vm1, %v868_v31 }
 0x6d5 PF: > { %s20_s15 = sadd.s32 1, %s1117_s15   ;;  %s1313_s13 = smov %s1113_s14 }
 0x6d6   : > { %p17_p5 = scmp.ge.s32.totalorder %s20_s15, 4   ;;  %s1314_s14 = smov %s1316_s16 }
 0x6d8   :  { %19 = sbr.rel (!%p17_p5) target bundleno = 2 (0x2), region = 93 }

// kernel: movie_classification_forward.14
= control target key start
LH: loop header
LB: loop body
LE: loop exit
PB: predicated region body
PF: predicated region fallthrough
CT: control target
= control target key end

     0   :  { %s1108_s27 = smov 0   ;;  %s1110_s28 = smov 0   ;;  %s1224_s0 = inlined_call_operand.vmem [shape: f32[2,8,32], index: 0, kind: input, shape index: {}, may-alias: {0,1}]   ;;  %s1225_s1 = inlined_call_operand.vmem [shape: f32[2,8,32], index: 1, kind: input, shape index: {}, may-alias: {0,1}]   ;;  %s1226_s2 = inlined_call_operand.vmem [shape: bf16[32,96], index: 2, kind: input, shape index: {}]   ;;  %s1227_s3 = inlined_call_operand.vmem [shape: f32[1,96], index: 3, kind: input, shape index: {}]   ;;  %s1228_s4 = inlined_call_operand.vmem [shape: bf16[32,32], index: 4, kind: input, shape index: {}]   ;;  %s1229_s5 = inlined_call_operand.vmem [shape: f32[1,32], index: 5, kind: input, shape index: {}]   ;;  %s1230_s6 = inlined_call_operand.vmem [shape: f32[1,32], index: 6, kind: input, shape index: {}]   ;;  %s1231_s7 = inlined_call_operand.vmem [shape: f32[1,32], index: 7, kind: input, shape index: {}]   ;;  %s1232_s8 = inlined_call_operand.vmem [shape: f32[2,8,32], index: 8, kind: output, shape index: {}]  }
   0x1   :  { %s1112_s29 = smov 0  }
   0x2 LB: > { %s30_s30 = sadd.s32 1, %s1051_s28  ;;  %p903_p0 = scmp.ge.s32.totalorder %s1055_s29, 1  ;;  %s1055_s29 = sphi %s1112_s29, %s18_s29   ;;  %s1051_s28 = sphi %s1110_s28, %s1234_s28   ;;  %s1047_s27 = sphi %s1108_s27, %s1233_s27  }
   0x3   : > { %p32_p1 = scmp.ge.s32.totalorder %s30_s30, 2  ;;  %p289_p2 = scmp.lt.s32.totalorder %s1055_s29, 3 }
   0x5   : > { %s1236_s30 = smov (%p32_p1, %s30_s30), 0  ;;  %p290_p3 = pnand %p903_p0, %p289_p2 }
   0x6   : > { %v1019_v0 = vld [vmem:[%s1226_s2] sm:$0xff] (!%p290_p3)   ;;  %s1057_s11 = smov (!%p290_p3), 96   ;;  %v1020_v1 = vld [vmem:[%s1226_s2 + $0x8] sm:$0xff] (!%p290_p3)   ;;  %v1058_v2 = vmov (!%p290_p3), 0.0   ;;  %p331_p4 = scmp.lt.s32.totalorder (!%p290_p3), %s1047_s27, 1  ;;  %vm1059_vm0 = vmmov (!%p290_p3), 0   ;;  %v481_v27 = vlaneseq (!%p290_p3) }
   0x7   : > { %293 = sbr.rel (%p290_p3) target bundleno = 1860 (0x744), region = 52  ;;  %421 = vrot.lane.b32.xlu0 (!%p290_p3), %v1019_v0, %s1057_s11  ;;  %949 = vmatprep.subr.bf16.mxu1 (!%p290_p3), %v1058_v2  ;;  %v907_v3 = vld [vmem:[%s1227_s3] ss:$0 sm:$0xff] (!%p290_p3)  ;;  %vm376_vm1 = vcmask (!%p290_p3), 261120   ;;  %s1060_s23 = smov (!%p290_p3), 112   ;;  %vm489_vm2 = vcmask (!%p290_p3), 130048  }
   0x8   : > { %941 = vmatprep.subr.bf16.mxu0 (!%p290_p3), %v1058_v2  ;;  %953 = vmatprep.mubr.msk.bf16.mxu1 (!%p290_p3), %vm1059_vm0, %v1058_v2  ;;  %v482_v28 = vshrl.u32 (!%p290_p3), %v481_v27, 7  ;;  %v486_v29 = vand.u32 (!%p290_p3), 127, %v481_v27  ;;  %vm538_vm4 = vcmask (!%p290_p3), 64512   ;;  %s1061_s24 = smov (!%p290_p3), 80   ;;  %vm557_vm5 = vcmask (!%p290_p3), 1043456   ;;  %s1062_s10 = smov (!%p290_p3), 16  }
   0x9   : > { %942 = vmatpush3.bf16.msra.mxu0 (!%p290_p3), %v1019_v0  ;;  %945 = vmatprep.mubr.msk.bf16.mxu0 (!%p290_p3), %vm1059_vm0, %v1058_v2 }
   0xa   : > { %943 = vmatprep.subr.bf16.mxu0 (!%p290_p3), %v1058_v2  ;;  %427 = vrot.lane.b32.xlu1 (!%p290_p3), %v907_v3, %s1057_s11  ;;  %vm487_vm3 = vcmp.gt.s32.totalorder (!%p290_p3), %v486_v29, %v482_v28 }
   0xb   : > { %423 = vrot.lane.b32.xlu0 (!%p290_p3), %v1020_v1, %s1057_s11  ;;  %v488_v31 = vsel (!%p290_p3), %vm487_vm3, -1e+09, %v1058_v2 }
   0xd   : > { %944 = vmatpush3.bf16.msra.mxu0 (!%p290_p3), %v1020_v1 }
   0xe   : > { %s1238_s27 = smov (!%p331_p4, %s1047_s27), 1  ;;  %957 = vmatprep.subr.bf16.mxu0 %v1058_v2 }
   0xf   : > { %s1145_s16 = sshll.u32 %s1238_s27, 3 }
  0x10   : > { %s337_s19 = scalar_lea.vmem %s1224_s0, %s1145_s16  ;;  %s341_s22 = scalar_lea.vmem %s1225_s1, %s1145_s16 }
  0x11   : > { %v1151_v4 = vld [vmem:[%s337_s19] sm:$0xff]  ;;  %s348_s20 = scalar_lea.vmem %s1232_s8, %s1145_s16 }
  0x12   : > { %v357_v5 = vpack.c.bf16 %v1151_v4, %v1151_v4  ;;  %v351_v7 = vld [vmem:[%s341_s22] sm:$0xff] }
  0x13   : > { %v420_v9 = vpack.c.bf16 %v351_v7, %v351_v7 }
  0x14   : > { %946 = vmatmul.mubr.msk.bf16.vlgmr.msra.gmra.mrb[0].mxu0 %vm376_vm1, %v357_v5  ;;  %v1021_v5 = vld [vmem:[%s1228_s4] sm:$0xff]  }
  0x15   : > { %959 = vmatprep.mubr.msk.bf16.mxu0 %vm1059_vm0, %v1058_v2 }
  0x79   : > { %v422_v6 = vpop.permute.xlu0 %421 }
  0x7a   : > { %950 = vmatpush3.bf16.msra.mxu1 %v422_v6 }
  0x7b   : > { %951 = vmatprep.subr.bf16.mxu1 %v1058_v2 }
  0x7c   : > { %v428_v16 = vpop.permute.xlu1 %427 }
  0x7d   : > { %v424_v8 = vpop.permute.xlu0 %423 }
  0x7e   : > { %952 = vmatpush3.bf16.msra.mxu1 %v424_v8 }
  0x7f   : > { %963 = vmatprep.subr.bf16.mxu1 %v1058_v2 }
  0x81   : > { %954 = vmatmul.mubr.msk.bf16.vlgmr.msra.gmra.mrb[0].mxu1 %vm376_vm1, %v420_v9 }
  0x82   : > { %965 = vmatprep.mubr.msk.bf16.mxu1 %vm1059_vm0, %v1058_v2 }
  0xe7   : > { %v414_v10 = vpop.f32.mrb[0].mxu0 }
  0xe8   : > { %v415_v11 = vadd.f32 %v907_v3, %v414_v10  ;;  %v947_v12 = vpop.f32.mrb[1].mxu0  ;;  %v1022_v10 = vld [vmem:[%s1228_s4 + $0x8] sm:$0xff]  }
  0xe9   : > { %v417_v13 = vpop.f32.mrb[2].mxu0 }
  0xea   : > { %v479_v14 = vpack.c.bf16 %v415_v11, %v415_v11  ;;  %v948_v15 = vpop.f32.mrb[3].mxu0 }
  0xec   : > { %602 = vrot.lane.b32.xlu0 %v479_v14, %s1060_s23 }
 0x154   : > { %v467_v17 = vpop.f32.mrb[0].mxu1 }
 0x155   : > { %v468_v18 = vadd.f32 %v467_v17, %v428_v16  ;;  %v955_v19 = vpop.f32.mrb[1].mxu1 }
 0x156   : > { %v470_v20 = vpop.f32.mrb[2].mxu1 }
 0x157   : > { %v480_v21 = vpack.c.bf16 %v468_v18, %v468_v18  ;;  %v956_v22 = vpop.f32.mrb[3].mxu1 }
 0x159   : > { %604 = vrot.lane.b32.xlu1 %v480_v21, %s1060_s23  ;;  %v494_v23 = vsel %vm489_vm2, %v480_v21, 0 }
 0x15a   : > { %958 = vmatpush3.bf16.xpose.msra.mxu0 %v494_v23 }
 0x15b   : > { %969 = vmatprep.subr.bf16.mxu0 %v1058_v2 }
 0x15e   : > { %v603_v26 = vpop.permute.xlu0 %602 }
 0x161   : > { %960 = vmatmul.mubr.msk.bf16.vlgmr.msra.gmra.mrb[4].mxu0 %vm489_vm2, %v479_v14 }
 0x162   : > { %971 = vmatprep.mubr.msk.bf16.mxu0 %vm1059_vm0, %v1058_v2 }
 0x1cb   : > { %v605_v24 = vpop.permute.xlu1 %604 }
 0x1cc   : > { %v610_v25 = vsel %vm489_vm2, %v605_v24, 0 }
 0x1cd   : > { %970 = vmatpush3.bf16.xpose.msra.mxu0 %v610_v25 }
 0x1ce   : > { %981 = vmatprep.subr.bf16.mxu0 %v1058_v2 }
 0x1d4   : > { %972 = vmatmul.mubr.msk.bf16.vlgmr.msra.gmra.mrb[8].mxu0 %vm489_vm2, %v603_v26 }
 0x1d5   : > { %985 = vmatprep.mubr.msk.bf16.mxu0 %vm1059_vm0, %v1058_v2  ;;  %982 = vmatpush3.bf16.msra.mxu0 %v1021_v5 }
 0x1d6   : > { %983 = vmatprep.subr.bf16.mxu0 %v1058_v2 }
 0x1d9   : > { %984 = vmatpush3.bf16.msra.mxu0 %v1022_v10 }
 0x234   : > { %v530_v30 = vpop.f32.mrb[4].mxu0 }
 0x235   : > { %v536_v32 = vmul.f32 0.25, %v530_v30  ;;  %v961_v33 = vpop.f32.mrb[5].mxu0 }
 0x236   : > { %v533_v34 = vpop.f32.mrb[6].mxu0 }
 0x237   : > { %v962_v35 = vpop.f32.mrb[7].mxu0  ;;  %v537_v36 = vadd.f32 %v536_v32, %v488_v31 }
 0x238   : > { %v921_v35 = vld [vmem:[%s1231_s7] ss:$0 sm:$0xff] }
 0x239   : > { %v539_v37 = vsel %vm538_vm4, %v537_v36, -inf }
 0x23a   : > { %540 = vmax.xlane.f32.xlu1 %v539_v37 }
 0x2a7   : > { %v646_v38 = vpop.f32.mrb[8].mxu0 }
 0x2a8   : > { %v652_v39 = vmul.f32 0.25, %v646_v38  ;;  %v973_v40 = vpop.f32.mrb[9].mxu0 }
 0x2a9   : > { %v649_v41 = vpop.f32.mrb[10].mxu0 }
 0x2aa   : > { %v974_v42 = vpop.f32.mrb[11].mxu0  ;;  %v653_v43 = vadd.f32 %v652_v39, %v488_v31 }
 0x2ac   : > { %v654_v44 = vsel %vm538_vm4, %v653_v43, -inf }
 0x2ad   : > { %655 = vmax.xlane.f32.xlu0 %v654_v44 }
 0x2c7   : > { %v541_v45 = vpop.xlane.xlu1 %540 }
 0x2c8   : > { %v542_v46 = vsub.f32 %v537_v36, %v541_v45 }
 0x2ca   : > { %v543_v47 = vmul.f32 1.442695, %v542_v46 }
 0x2cc   : > { %1023 = vpow2.f32 %v543_v47 }
 0x2d6   : > { %v1024_v48 = vpop.eup %1023 }
 0x2d7   : > { %v545_v49 = vsel %vm538_vm4, %v1024_v48, 0.0 }
 0x2d8   : > { %546 = vadd.xlane.f32.xlu0 %v545_v49 }
 0x2ee   : > { %552 = vrot.lane.b32.xlu0 %v480_v21, %s1057_s11 }
 0x33a   : > { %v656_v50 = vpop.xlane.xlu0 %655 }
 0x33b   : > { %v657_v51 = vsub.f32 %v653_v43, %v656_v50 }
 0x33d   : > { %v658_v52 = vmul.f32 1.442695, %v657_v51 }
 0x33f   : > { %1025 = vpow2.f32 %v658_v52 }
 0x349   : > { %v1026_v53 = vpop.eup %1025 }
 0x34a   : > { %v660_v54 = vsel %vm538_vm4, %v1026_v53, 0.0 }
 0x34b   : > { %661 = vadd.xlane.f32.xlu1 %v660_v54 }
 0x35c   : > { %666 = vrot.lane.b32.xlu1 %v480_v21, %s1061_s24 }
 0x365   : > { %v547_v55 = vpop.xlane.xlu0 %546 }
 0x366   : > { %1027 = vrcp.f32 %v547_v55 }
 0x369   : > { %v553_v56 = vpop.permute.xlu0 %552 }
 0x36a   : > { %v559_v57 = vsel %vm557_vm5, %v553_v56, 0 }
 0x36b   : > { %964 = vmatpush3.bf16.msra.mxu1 %v559_v57 }
 0x36c   : > { %975 = vmatprep.subr.bf16.mxu1 %v1058_v2 }
 0x370   : > { %v1028_v58 = vpop.eup %1027 }
 0x371   : > { %v549_v59 = vmul.f32 %v1028_v58, %v1024_v48 }
 0x373   : > { %v550_v60 = vpack.c.bf16 %v549_v59, %v549_v59 }
 0x375   : > { %966 = vmatmul.mubr.msk.bf16.vlgmr.msra.gmra.mrb[4].mxu1 %vm538_vm4, %v550_v60 }
 0x376   : > { %977 = vmatprep.mubr.msk.bf16.mxu1 %vm1059_vm0, %v1058_v2  ;;  %v916_v2 = vld [vmem:[%s1229_s5] ss:$0 sm:$0xff] }
 0x3d8   : > { %v662_v61 = vpop.xlane.xlu1 %661 }
 0x3d9   : > { %1029 = vrcp.f32 %v662_v61 }
 0x3dc   : > { %v667_v62 = vpop.permute.xlu1 %666 }
 0x3dd   : > { %v672_v63 = vsel %vm557_vm5, %v667_v62, 0 }
 0x3de   : > { %976 = vmatpush3.bf16.msra.mxu1 %v672_v63 }
 0x3e3   : > { %v1030_v0 = vpop.eup %1029 }
 0x3e4   : > { %v664_v1 = vmul.f32 %v1030_v0, %v1026_v53 }
 0x3e6   : > { %v665_v3 = vpack.c.bf16 %v664_v1, %v664_v1 }
 0x3e8   : > { %978 = vmatmul.mubr.msk.bf16.vlgmr.msra.gmra.mrb[8].mxu1 %vm538_vm4, %v665_v3 }
 0x448   : > { %v595_v6 = vpop.f32.mrb[4].mxu1 }
 0x449   : > { %v967_v7 = vpop.f32.mrb[5].mxu1 }
 0x44a   : > { %v598_v8 = vpop.f32.mrb[6].mxu1 }
 0x44b   : > { %v968_v9 = vpop.f32.mrb[7].mxu1 }
 0x4bb   : > { %v708_v11 = vpop.f32.mrb[8].mxu1 }
 0x4bc   : > { %715 = vrot.lane.b32.xlu1 %v708_v11, %s1062_s10  ;;  %v979_v12 = vpop.f32.mrb[9].mxu1 }
 0x4bd   : > { %v711_v13 = vpop.f32.mrb[10].mxu1 }
 0x4be   : > { %v980_v14 = vpop.f32.mrb[11].mxu1 }
 0x52e   : > { %v716_v15 = vpop.permute.xlu1 %715 }
 0x52f   : > { %v718_v16 = vsel %vm489_vm2, %v595_v6, %v716_v15 }
 0x530   : > { %v719_v17 = vpack.c.bf16 %v718_v16, %v718_v16 }
 0x532   : > { %986 = vmatmul.mubr.msk.bf16.vlgmr.msra.gmra.mrb[12].mxu0 %vm376_vm1, %v719_v17 }
 0x605   : > { %v775_v18 = vpop.f32.mrb[12].mxu0 }
 0x606   : > { %v776_v19 = vadd.f32 %v916_v2, %v775_v18  ;;  %v987_v20 = vpop.f32.mrb[13].mxu0 }
 0x607   : > { %v778_v21 = vpop.f32.mrb[14].mxu0 }
 0x608   : > { %v988_v22 = vpop.f32.mrb[15].mxu0  ;;  %v781_v23 = vadd.f32 %v776_v19, %v1151_v4  ;;  %v920_v4 = vld [vmem:[%s1230_s6] ss:$0 sm:$0xff] }
 0x60a   : > { %v784_v24 = vsel %vm376_vm1, %v781_v23, 0.0 }
 0x60b   : > { %785 = vadd.xlane.f32.xlu0 %v784_v24 }
 0x698   : > { %v786_v25 = vpop.xlane.xlu0 %785 }
 0x699   : > { %v788_v26 = vmul.f32 0.03125, %v786_v25 }
 0x69b   : > { %v789_v27 = vsub.f32 %v781_v23, %v788_v26 }
 0x69d   : > { %v790_v28 = vmul.f32 %v789_v27, %v789_v27 }
 0x69f   : > { %v791_v29 = vsel %vm376_vm1, %v790_v28, 0.0 }
 0x6a0   : > { %792 = vadd.xlane.f32.xlu1 %v791_v29 }
 0x72d   : > { %v793_v30 = vpop.xlane.xlu1 %792 }
 0x72e   : > { %v794_v31 = vmul.f32 0.03125, %v793_v30 }
 0x730   : > { %v795_v32 = vadd.f32 1e-06, %v794_v31 }
 0x732   : > { %1031 = vrsqrt.f32 %v795_v32 }
 0x73c   : > { %v1032_v33 = vpop.eup %1031 }
 0x73d   : > { %v797_v34 = vmul.f32 %v1032_v33, %v789_v27 }
 0x73f   : > { %v804_v36 = vmul.f32 %v920_v4, %v797_v34 }
 0x741   : > { %v811_v37 = vadd.f32 %v921_v35, %v804_v36 }
 0x743   : > { %812 = vst.msk [vmem:[%s348_s20] sm:$0xff] %vm376_vm1, %v811_v37 }
 0x744 PF: > { %s18_s29 = sadd.s32 1, %s1055_s29   ;;  %s1233_s27 = smov %s1051_s28 }
 0x745   : > { %p15_p5 = scmp.ge.s32.totalorder %s18_s29, 4   ;;  %s1234_s28 = smov %s1236_s30 }
 0x747   :  { %17 = sbr.rel (!%p15_p5) target bundleno = 2 (0x2), region = 85 }

// kernel: movie_classification_forward.19
= control target key start
LH: loop header
LB: loop body
LE: loop exit
PB: predicated region body
PF: predicated region fallthrough
CT: control target
= control target key end

     0   :  { %13 = vsyncpa [#allocation4], 0  ;;  %s1183_s0 = inlined_call_operand.vmem [shape: f32[2,8,32], index: 0, kind: input, shape index: {}]   ;;  %s1184_s1 = inlined_call_operand.vmem [shape: bf16[32,64], index: 1, kind: input, shape index: {}]   ;;  %s1185_s2 = inlined_call_operand.vmem [shape: f32[1,64], index: 2, kind: input, shape index: {}]   ;;  %s1186_s3 = inlined_call_operand.vmem [shape: bf16[64,32], index: 3, kind: input, shape index: {}]   ;;  %s1187_s4 = inlined_call_operand.vmem [shape: f32[1,32], index: 4, kind: input, shape index: {}]   ;;  %s1188_s5 = inlined_call_operand.vmem [shape: f32[1,32], index: 5, kind: input, shape index: {}]   ;;  %s1189_s6 = inlined_call_operand.vmem [shape: f32[1,32], index: 6, kind: input, shape index: {}]   ;;  %s1190_s7 = inlined_call_operand.vmem [shape: bf16[32,4], index: 7, kind: input, shape index: {}]   ;;  %s1191_s8 = inlined_call_operand.hbm [shape: f32[2,1,4], index: 8, kind: output, shape index: {}]  }
   0x1   :  { %15 = vsyncpa [#allocation4 + $0x1], 0  ;;  %s1013_s27 = smov 0   ;;  %s1015_s28 = smov 0  }
   0x2   :  { %s1017_s29 = smov 0   ;;  %s1019_s30 = smov 0  }
   0x3   :  { %s1021_s9 = smov 0   ;;  %s1023_s10 = smov 0  }
   0x4 LB: > { %s752_s11 = sadd.s32 4294967295, %s963_s10   ;;  %s753_s12 = sadd.s32 4294967294, %s963_s10   ;;  %s963_s10 = sphi %s1023_s10, %s21_s10   ;;  %s959_s9 = sphi %s1021_s9, %s1198_s9   ;;  %s955_s30 = sphi %s1019_s30, %s1197_s30   ;;  %s951_s29 = sphi %s1017_s29, %s1196_s29   ;;  %s947_s28 = sphi %s1015_s28, %s1195_s28   ;;  %s943_s27 = sphi %s1013_s27, %s1194_s27  }
   0x5   : > { %s33_s13 = sadd.s32 1, %s959_s9  ;;  %s228_s14 = sadd.s32 1, %s951_s29 }
   0x6   : > { %p35_p0 = scmp.ge.s32.totalorder %s33_s13, 2  ;;  %p238_p1 = scmp.ne.s32.totalorder %s951_s29, %s947_s28 }
   0x7   : > { %p239_p2 = scmp.eq.s32.totalorder %s752_s11, 1  ;;  %p244_p3 = scmp.ne.s32.totalorder %s947_s28, %s943_s27 }
   0x8   : > { %s1200_s13 = smov (%p35_p0, %s33_s13), 0  ;;  %p245_p5 = scmp.eq.s32.totalorder %s753_s12, 1 }
   0x9   : > { %p1053_p4 = por %p239_p2, %p238_p1  ;;  %s225_s16 = ssub.s32 %s959_s9, %s1200_s13 }
   0xa   : > { %p759_p6 = scmp.ge.s32.totalorder %s963_s10, 1  ;;  %p226_p7 = scmp.eq.s32.totalorder %s225_s16, 0 }
   0xb   : > { %p1060_p8 = por %p245_p5, %p244_p3  ;;  %p304_p9 = scmp.lt.s32.totalorder %s963_s10, 3 }
   0xc   : > { %s1066_s18 = scalar_select %p226_p7, %s951_s29, %s228_s14  }
   0xd   : > { %p305_p10 = pnand %p759_p6, %p304_p9 }
   0xe   : > { %v875_v0 = vld [vmem:[%s1184_s1] sm:$0xff] (!%p305_p10)   ;;  %v965_v1 = vmov (!%p305_p10), 0.0   ;;  %v876_v2 = vld [vmem:[%s1184_s1 + $0x8] sm:$0xff] (!%p305_p10)   ;;  %vm966_vm0 = vmmov (!%p305_p10), 0   ;;  %p348_p11 = scmp.lt.s32.totalorder (!%p305_p10), %s955_s30, 1  ;;  %vm370_vm1 = vcmask (!%p305_p10), 261120  }
   0xf   : > { %308 = sbr.rel (%p305_p10) target bundleno = 1028 (0x404), region = 52  ;;  %790 = vmatprep.subr.bf16.mxu0 (!%p305_p10), %v965_v1  ;;  %798 = vmatprep.subr.bf16.mxu1 (!%p305_p10), %v965_v1  ;;  %371 = vst.msk [vmem:[#allocation2] sm:$0xff] (!%p305_p10), %vm370_vm1, %v965_v1  ;;  %v877_v3 = vld [vmem:[%s1186_s3] sm:$0xff] (!%p305_p10)   ;;  %v878_v4 = vld [vmem:[%s1186_s3 + $0x8] sm:$0xff] (!%p305_p10)   ;;  %v879_v7 = vld [vmem:[%s1186_s3 + $0x10] sm:$0xff] (!%p305_p10)   ;;  %vm476_vm2 = vcmask (!%p305_p10), 523264  }
  0x10   : > { %791 = vmatpush3.bf16.msra.mxu0 (!%p305_p10), %v875_v0  ;;  %794 = vmatprep.mubr.msk.bf16.mxu0 (!%p305_p10), %vm966_vm0, %v965_v1  ;;  %v880_v8 = vld [vmem:[%s1186_s3 + $0x18] sm:$0xff] (!%p305_p10)   ;;  %v761_v9 = vld [vmem:[%s1185_s2] ss:$0 sm:$0xff] (!%p305_p10)  ;;  %v882_v34 = vld [vmem:[%s1190_s7 + $0x8] sm:$0xff] (!%p305_p10)   ;;  %s346_s24 = sand.u32 (!%p305_p10), 1, %s947_s28   ;;  %vm632_vm3 = vcmask (!%p305_p10), 24576  }
  0x11   : > { %792 = vmatprep.subr.bf16.mxu0 (!%p305_p10), %v965_v1  ;;  %806 = vmatprep.mubr.msk.bf16.mxu1 (!%p305_p10), %vm966_vm0, %v965_v1  ;;  %v770_v24 = vld [vmem:[%s1187_s4] ss:$0 sm:$0xff] (!%p305_p10)  ;;  %s347_s26 = scalar_lea.vmem (!%p305_p10), [#allocation3], %s346_s24 }
  0x12   : > { %799 = vmatpush3.bf16.msra.mxu1 (!%p305_p10), %v877_v3  ;;  %v881_v33 = vld [vmem:[%s1190_s7] sm:$0xff] (!%p305_p10)   ;;  %s647_s11 = sshll.u32 (!%p305_p10), %s347_s26, 4  ;;  %s1138_s11 = int_to_ptr.vmem [resolvable:$true] %s647_s11 }
  0x13   : > { %800 = vmatprep.subr.bf16.mxu1 (!%p305_p10), %v965_v1  ;;  %v771_v39 = vld [vmem:[%s1188_s5] ss:$0 sm:$0xff] (!%p305_p10)  ;;  %s885_s20 = scalar_lea.vmem (!%p305_p10), %s1138_s11, 16 }
  0x14   : > { %793 = vmatpush3.bf16.msra.mxu0 (!%p305_p10), %v876_v2  ;;  %v772_v41 = vld [vmem:[%s1189_s6] ss:$0 sm:$0xff] (!%p305_p10)  ;;  %p886_p12 = scmp.ne.s32.totalorder (!%p305_p10), %s1138_s11, %s885_s20 }
  0x15   : > { %810 = vmatprep.subr.bf16.mxu0 (!%p305_p10), %v965_v1 }
  0x16   : > { %s349_s25 = scalar_select %p348_p11, %s955_s30, 1  ;;  %801 = vmatpush3.bf16.msra.mxu1 %v878_v4  ;;  %v450_v17 = vld [vmem:[#allocation2] sm:$0xff] }
  0x17   : > { %802 = vmatprep.subr.bf16.mxu1 %v965_v1  ;;  %p887_p13 = pnand %p886_p12, %p1053_p4 }
  0x18   : > { %s760_s12 = sshll.u32 %s349_s25, 3  ;;  %s776_s25 = sshll.u32 %s955_s30, 4 }
  0x19   : > { %s351_s19 = scalar_lea.vmem %s1183_s0, %s760_s12  ;;  %s1136_s16 = scalar_lea.hbm %s1191_s8, %s776_s25 }
  0x1a   : > { %v372_v5 = vld [vmem:[%s351_s19] sm:$0xff]  ;;  %803 = vmatpush3.bf16.msra.mxu1 %v879_v7  ;;  %s635_s19 = scalar_lea.sflag [#allocation4], %s346_s24  ;;  %p888_p0 = pneg %p887_p13 }
  0x1b   : > { %v377_v6 = vpack.c.bf16 %v372_v5, %v372_v5  ;;  %804 = vmatprep.subr.bf16.mxu1 %v965_v1  ;;  %s967_s30 = smov [#allocation3]  }
  0x1c   : > { %s889_s21 = sshll.u32 %s967_s30, 4  ;;  %s890_s21 = int_to_ptr.vmem [resolvable:$false] %s889_s21 }
  0x1d   : > { %795 = vmatmul.mubr.msk.bf16.vlgmr.msra.gmra.mrb[0].mxu0 %vm370_vm1, %v377_v6  ;;  %s891_s22 = scalar_lea.vmem %s890_s21, 32  ;;  %p892_p1 = scmp.lt.s32.totalorder %s1138_s11, %s890_s21 }
  0x1e   : > { %814 = vmatprep.mubr.msk.bf16.mxu0 %vm966_vm0, %v965_v1  ;;  %805 = vmatpush3.bf16.msra.mxu1 %v880_v8  ;;  %p893_p2 = scmp.lt.s32.totalorder %s891_s22, %s885_s20 }
  0x1f   : > { %811 = vmatpush3.bf16.msra.mxu0 %v881_v33 }
  0x20   : > { %812 = vmatprep.subr.bf16.mxu0 %v965_v1  ;;  %p894_p3 = por %p893_p2, %p892_p1 }
  0x22   : > { %p895_p5 = pnand %p894_p3, %p888_p0 }
  0x23   : > { %813 = vmatpush3.bf16.msra.mxu0 %v882_v34 }
  0xf0   : > { %v435_v10 = vpop.f32.mrb[0].mxu0 }
  0xf1   : > { %v436_v11 = vadd.f32 %v761_v9, %v435_v10  ;;  %v796_v12 = vpop.f32.mrb[1].mxu0 }
  0xf2   : > { %v438_v13 = vpop.f32.mrb[2].mxu0 }
  0xf3   : > { %v441_v14 = vmax.f32 %v436_v11, 0.0  ;;  %v797_v15 = vpop.f32.mrb[3].mxu0 }
  0xf5   : > { %v451_v16 = vpack.c.bf16 %v441_v14, %v441_v14 }
  0xf7   : > { %807 = vmatmul.mubr.msk.bf16.vlgmr.msra.gmra.mrb[0].mxu1 %vm476_vm2, %v451_v16 }
 0x1ca   : > { %v514_v18 = vpop.f32.mrb[0].mxu1 }
 0x1cb   : > { %v520_v19 = vadd.f32 %v514_v18, %v450_v17  ;;  %v808_v20 = vpop.f32.mrb[1].mxu1 }
 0x1cc   : > { %v517_v21 = vpop.f32.mrb[2].mxu1 }
 0x1cd   : > { %521 = vst.msk [vmem:[#allocation2] sm:$0xff] %vm370_vm1, %v520_v19  ;;  %v809_v22 = vpop.f32.mrb[3].mxu1 }
 0x1d4   : > { %v525_v23 = vld [vmem:[#allocation2] sm:$0xff] }
 0x1d5   : > { %v526_v25 = vadd.f32 %v525_v23, %v372_v5 }
 0x1d7   : > { %v534_v26 = vadd.f32 %v770_v24, %v526_v25 }
 0x1d9   : > { %v537_v27 = vsel %vm370_vm1, %v534_v26, 0.0 }
 0x1da   : > { %538 = vadd.xlane.f32.xlu0 %v537_v27 }
 0x267   : > { %v539_v28 = vpop.xlane.xlu0 %538 }
 0x268   : > { %v541_v29 = vmul.f32 0.03125, %v539_v28 }
 0x26a   : > { %v542_v30 = vsub.f32 %v534_v26, %v541_v29 }
 0x26c   : > { %v543_v31 = vmul.f32 %v542_v30, %v542_v30 }
 0x26e   : > { %v544_v32 = vsel %vm370_vm1, %v543_v31, 0.0 }
 0x26f   : > { %545 = vadd.xlane.f32.xlu0 %v544_v32 }
 0x2fc   : > { %v546_v35 = vpop.xlane.xlu0 %545 }
 0x2fd   : > { %v547_v36 = vmul.f32 0.03125, %v546_v35 }
 0x2ff   : > { %v548_v37 = vadd.f32 1e-06, %v547_v36 }
 0x301   : > { %883 = vrsqrt.f32 %v548_v37 }
 0x30b   : > { %v884_v38 = vpop.eup %883 }
 0x30c   : > { %v550_v40 = vmul.f32 %v884_v38, %v542_v30 }
 0x30e   : > { %v557_v42 = vmul.f32 %v771_v39, %v550_v40 }
 0x310   : > { %v564_v43 = vadd.f32 %v772_v41, %v557_v42 }
 0x312   : > { %v565_v44 = vsel %vm370_vm1, %v564_v43, -inf }
 0x313   : > { %v566_v45 = vrot.slane %v565_v44, 4 }
 0x315   : > { %v567_v46 = vmax.f32 %v565_v44, %v566_v45 }
 0x317   : > { %v568_v47 = vrot.slane %v567_v46, 2 }
 0x319   : > { %v569_v48 = vmax.f32 %v567_v46, %v568_v47 }
 0x31b   : > { %v570_v49 = vrot.slane %v569_v48, 1 }
 0x31d   : > { %v571_v50 = vmax.f32 %v569_v48, %v570_v49 }
 0x31f   : > { %v576_v51 = vpack.c.bf16 %v571_v50, %v571_v50 }
 0x321   : > { %815 = vmatmul.mubr.msk.bf16.vlgmr.msra.gmra.mrb[4].mxu0 %vm370_vm1, %v576_v51 }
 0x3f4   : > { %v626_v52 = vpop.f32.mrb[4].mxu0 }
 0x3f5   : > { %633 = vst.msk [vmem:[%s347_s26] sm:$0x1] %vm632_vm3, %v626_v52  ;;  %v816_v53 = vpop.f32.mrb[5].mxu0 }
 0x3f6   : > { %v629_v54 = vpop.f32.mrb[6].mxu0 }
 0x3f7   : > { %898 = shalt.err (!%p895_p5)
}
 0x3f8   : > { %s899_s23 = scalar_lea.hbm %s1136_s16, 16  ;;  %s903_s26 = scalar_lea.hbm %s1191_s8, 32 }
 0x3f9   : > { %p900_p6 = scmp.ne.s32.totalorder %s1136_s16, %s899_s23  ;;  %p904_p10 = scmp.lt.u32.totalorder %s1136_s16, %s1191_s8 }
 0x3fa   : > { %p905_p11 = scmp.lt.u32.totalorder %s903_s26, %s899_s23  ;;  %p907_p13 = scmp.lt.u32.totalorder %s899_s23, %s1136_s16 }
 0x3fb   : > { %p901_p7 = pnand %p900_p6, %p1053_p4 }
 0x3fc   : > { %p906_p12 = por %p905_p11, %p904_p10 }
 0x3fd   : > { %p902_p9 = pneg %p901_p7 }
 0x3fe   : > { %p908_p0 = por %p907_p13, %p906_p12 }
 0x400   : > { %p909_p1 = pnand %p908_p0, %p902_p9 }
 0x402   : > { %912 = shalt.err (!%p909_p1)
}
 0x403   : > { %818 = dma.vmem_to_hbm [thread:$0]  (%p1053_p4), %s1138_s11, 16, %s1136_s16, %s635_s19   ;;  %v817_v55 = vpop.f32.mrb[7].mxu0 }
 0x404 PF: > { %p824_p2 = scmp.ge.s32.totalorder %s963_s10, 2  ;;  %s659_s20 = sand.u32 1, %s943_s27  }
 0x405   : > { %s660_s30 = scalar_lea.sflag [#allocation4], %s659_s20 }
 0x406   : > { %p821_p3 = pnand %p824_p2, %p1060_p8 }
 0x408   : > { %938 = dma.done.wait (!%p821_p3), %s660_s30, 16  }
 0x409   : > { %940 = vsyncadd (!%p821_p3), %s660_s30, 4294967280  ;;  %s21_s10 = sadd.s32 1, %s963_s10   ;;  %s1194_s27 = smov %s947_s28 }
 0x40a   : > { %p18_p5 = scmp.ge.s32.totalorder %s21_s10, 4   ;;  %s1195_s28 = smov %s951_s29 }
 0x40b   : > { %s1196_s29 = smov %s1066_s18  ;;  %s1197_s30 = smov %s959_s9 }
 0x40c   : > { %s1198_s9 = smov %s1200_s13  ;;  %20 = sbr.rel (!%p18_p5) target bundleno = 4 (0x4), region = 104 }
 0x413   :  { %664 = vsyncpa [#allocation4], 1 }
 0x414   :  { %666 = vsyncpa [#allocation4 + $0x1], 1 }

</bundles_post_ra>
